<compile_context>
chip_gen: v5e
topology: v5e:2x2
jax: 0.10.0
libtpu: 0.0.40
codegen_flags: <defaults>
</compile_context>

<pallas_src>
import functools

import jax
import jax.numpy as jnp
from jax import lax
from jax.experimental import pallas as pl
from jax.experimental.pallas import tpu as pltpu


def _rnn_tagger_kernel(x_ref, wih_ref, whh_ref, b_ref, wout_ref, bout_ref,
                       out_ref, gx_ref, hs_ref, *, hidden_pad, row_block):
    Hp = hidden_pad
    Sp = x_ref.shape[0]
    n_blocks = Sp // row_block

    # ---- 1) batched input projection (one MXU pass for all timesteps) ----
    gx_ref[...] = (jnp.dot(x_ref[...], wih_ref[...],
                           preferred_element_type=jnp.float32)
                   + b_ref[...])                                   # (Sp, 4Hp) f32

    # ---- 2) sequential LSTM recurrence; h/c live in registers ----
    def block_step(blk, carry):
        h, c = carry                                               # (1, Hp) f32
        base = pl.multiple_of(blk * row_block, row_block)
        rows = []
        for j in range(row_block):                                 # static inner unroll
            g = gx_ref[pl.ds(base + j, 1), :] + jnp.dot(
                h.astype(jnp.bfloat16), whh_ref[...],
                preferred_element_type=jnp.float32)                # (1, 4Hp) f32

            # lane-aligned full-vreg gate slices (Hp is a multiple of 128)
            i_g = jax.nn.sigmoid(g[:, 0 * Hp:1 * Hp])
            f_g = jax.nn.sigmoid(g[:, 1 * Hp:2 * Hp])
            g_g = jnp.tanh(g[:, 2 * Hp:3 * Hp])
            o_g = jax.nn.sigmoid(g[:, 3 * Hp:4 * Hp])

            c = f_g * c + i_g * g_g
            h = o_g * jnp.tanh(c)
            rows.append(h)
        # one full (row_block, Hp) tile store per block (no per-step vst.msk)
        hs_ref[pl.ds(base, row_block), :] = jnp.concatenate(rows, axis=0)
        return (h, c)

    h0 = jnp.zeros((1, Hp), jnp.float32)
    c0 = jnp.zeros((1, Hp), jnp.float32)
    lax.fori_loop(0, n_blocks, block_step, (h0, c0),
                  unroll=True if n_blocks <= 8 else 2)

    # ---- 3) batched tag head + softmax (lane-dense, padded tag width) ----
    logits = (jnp.dot(hs_ref[...].astype(jnp.bfloat16), wout_ref[...],
                      preferred_element_type=jnp.float32)
              + bout_ref[...])                                     # (Sp, Tp) f32
    m = jnp.max(logits, axis=-1, keepdims=True)
    e = jnp.exp(logits - m)                                        # padded lanes -> 0
    denom = jnp.sum(e, axis=-1, keepdims=True)
    out_ref[...] = e * pl.reciprocal(denom, approx=True)


def rnn_tagger_forward(sentence, params, hidden_dim):
    """sentence: (S, E) f32.  Returns (S, tagset_size) softmax tag scores."""
    S, E = sentence.shape
    w_ih, w_hh, b_ih, b_hh, w_out, b_out = params
    H = hidden_dim
    T = w_out.shape[0]
    Hp = ((H + 127) // 128) * 128          # lane-aligned hidden width
    Tp = ((T + 127) // 128) * 128          # lane-aligned tag width
    ROW_BLOCK = 8
    Sp = ((S + ROW_BLOCK - 1) // ROW_BLOCK) * ROW_BLOCK

    # --- plain-JAX glue: transpose + zero-pad each gate block to width Hp ---
    def pad_gate_cols(w_t):                # (in_dim, 4H) -> (in_dim, 4Hp)
        in_dim = w_t.shape[0]
        w4 = w_t.reshape(in_dim, 4, H)
        w4 = jnp.pad(w4, ((0, 0), (0, 0), (0, Hp - H)))
        return w4.reshape(in_dim, 4 * Hp)

    x_p = jnp.pad(sentence, ((0, Sp - S), (0, 0))).astype(jnp.bfloat16)
    wih_t = pad_gate_cols(w_ih.T).astype(jnp.bfloat16)              # (E, 4Hp)
    whh_t = pad_gate_cols(
        jnp.pad(w_hh.T, ((0, Hp - H), (0, 0)))).astype(jnp.bfloat16)  # (Hp, 4Hp)
    b = pad_gate_cols((b_ih + b_hh).reshape(1, 4 * H))               # (1, 4Hp) f32
    wout_t = jnp.pad(w_out.T,
                     ((0, Hp - H), (0, Tp - T))).astype(jnp.bfloat16)  # (Hp, Tp)
    bout = jnp.pad(b_out.reshape(1, T), ((0, 0), (0, Tp - T)),
                   constant_values=-1e30)                            # (1, Tp) f32

    kernel = functools.partial(_rnn_tagger_kernel, hidden_pad=Hp,
                               row_block=ROW_BLOCK)
    vmem = pl.BlockSpec(memory_space=pltpu.MemorySpace.VMEM)

    # advisory cost estimate + explicit VMEM budget (v5e default is 16 MiB)
    flops = (2 * Sp * E * 4 * Hp          # input projection
             + 2 * Sp * Hp * 4 * Hp       # recurrence
             + 2 * Sp * Hp * Tp)          # tag head
    transcendentals = 6 * Sp * Hp + Sp * Tp
    in_out_bytes = (x_p.size * 2 + wih_t.size * 2 + whh_t.size * 2
                    + b.size * 4 + wout_t.size * 2 + bout.size * 4
                    + Sp * Tp * 4)
    scratch_bytes = Sp * 4 * Hp * 4 + Sp * Hp * 4
    vmem_limit = int(min(max(2 * (in_out_bytes + scratch_bytes),
                             8 * 1024 * 1024),
                         64 * 1024 * 1024))

    out = pl.pallas_call(
        kernel,
        out_shape=jax.ShapeDtypeStruct((Sp, Tp), jnp.float32),
        in_specs=[vmem] * 6,
        out_specs=vmem,
        scratch_shapes=[
            pltpu.VMEM((Sp, 4 * Hp), jnp.float32),   # precomputed input gates
            pltpu.VMEM((Sp, Hp), jnp.float32),       # hidden-state history
        ],
        compiler_params=pltpu.CompilerParams(vmem_limit_bytes=vmem_limit),
        cost_estimate=pl.CostEstimate(flops=int(flops),
                                      transcendentals=int(transcendentals),
                                      bytes_accessed=int(in_out_bytes)),
    )(x_p, wih_t, whh_t, b, wout_t, bout)
    return out[:S, :T]


def init_params(key, embedding_dim, hidden_dim, tagset_size):
    """Deterministic init mirroring PyTorch's U(-1/sqrt(H), 1/sqrt(H))."""
    k = jax.random.split(key, 6)
    s = 1.0 / jnp.sqrt(hidden_dim)
    w_ih = jax.random.uniform(k[0], (4 * hidden_dim, embedding_dim),
                              jnp.float32, -s, s)
    w_hh = jax.random.uniform(k[1], (4 * hidden_dim, hidden_dim),
                              jnp.float32, -s, s)
    b_ih = jax.random.uniform(k[2], (4 * hidden_dim,), jnp.float32, -s, s)
    b_hh = jax.random.uniform(k[3], (4 * hidden_dim,), jnp.float32, -s, s)
    w_out = jax.random.uniform(k[4], (tagset_size, hidden_dim),
                               jnp.float32, -s, s)
    b_out = jax.random.uniform(k[5], (tagset_size,), jnp.float32, -s, s)
    return (w_ih, w_hh, b_ih, b_hh, w_out, b_out)


def reference_forward(sentence, params, hidden_dim):
    """Pure-JAX f32 reference of the PyTorch forward (for sanity checking)."""
    w_ih, w_hh, b_ih, b_hh, w_out, b_out = params
    H = hidden_dim

    def cell(carry, x_t):
        h, c = carry
        g = x_t @ w_ih.T + b_ih + h @ w_hh.T + b_hh
        i = jax.nn.sigmoid(g[0 * H:1 * H])
        f = jax.nn.sigmoid(g[1 * H:2 * H])
        gg = jnp.tanh(g[2 * H:3 * H])
        o = jax.nn.sigmoid(g[3 * H:4 * H])
        c = f * c + i * gg
        h = o * jnp.tanh(c)
        return (h, c), h

    h0 = jnp.zeros((H,), jnp.float32)
    _, hs = lax.scan(cell, (h0, h0), sentence)
    logits = hs @ w_out.T + b_out
    return jax.nn.softmax(logits, axis=-1)


if __name__ == "__main__":
    SEQ_LEN = 8
    EMBEDDING_DIM = 16
    HIDDEN_DIM = 32
    TAGSET_SIZE = 8

    key = jax.random.PRNGKey(0)
    k_x, k_p = jax.random.split(key)
    sentence = jax.random.normal(k_x, (SEQ_LEN, EMBEDDING_DIM), jnp.float32)
    params = init_params(k_p, EMBEDDING_DIM, HIDDEN_DIM, TAGSET_SIZE)

    out = rnn_tagger_forward(sentence, params, HIDDEN_DIM)
    out = jax.block_until_ready(out)

    ref = reference_forward(sentence, params, HIDDEN_DIM)
    assert out.shape == (SEQ_LEN, TAGSET_SIZE)
    # bf16 matmul operands + approx reciprocal -> loosened tolerance vs f32 ref
    assert jnp.allclose(out, ref, atol=3e-2, rtol=0.0)
    assert jnp.allclose(jnp.sum(out, axis=-1), 1.0, atol=1e-2)

    print("KERNEL_OK")
</pallas_src>

<mosaic_0001>
module attributes {stable_mosaic.version = 11 : i64} {
  func.func @_rnn_tagger_kernel(%arg0: memref<8x16xbf16, #tpu.memory_space<vmem>>, %arg1: memref<16x512xbf16, #tpu.memory_space<vmem>>, %arg2: memref<128x512xbf16, #tpu.memory_space<vmem>>, %arg3: memref<1x512xf32, #tpu.memory_space<vmem>>, %arg4: memref<128x128xbf16, #tpu.memory_space<vmem>>, %arg5: memref<1x128xf32, #tpu.memory_space<vmem>>, %arg6: memref<8x128xf32, #tpu.memory_space<vmem>>, %arg7: memref<8x512xf32, #tpu.memory_space<vmem>>, %arg8: memref<8x128xf32, #tpu.memory_space<vmem>>) attributes {dimension_semantics = [], scalar_prefetch = 0 : i64, scratch_operands = 2 : i64, tpu.core_type = #tpu.core_type<tc>} {
    %c0 = arith.constant 0 : index
    %c0_0 = arith.constant 0 : index
    %0 = vector.load %arg0[%c0, %c0_0] : memref<8x16xbf16, #tpu.memory_space<vmem>>, vector<8x16xbf16>
    %c0_1 = arith.constant 0 : index
    %c0_2 = arith.constant 0 : index
    %1 = vector.load %arg1[%c0_1, %c0_2] : memref<16x512xbf16, #tpu.memory_space<vmem>>, vector<16x512xbf16>
    %cst = arith.constant dense<0.000000e+00> : vector<8x512xf32>
    %2 = tpu.matmul %0, %1, %cst {dimension_numbers = #tpu.dot_dimension_numbers<[1], [0], [0], [1], [0, 0, 1, 1], [], []>} : vector<8x16xbf16>, vector<16x512xbf16>, vector<8x512xf32> -> vector<8x512xf32>
    %c0_3 = arith.constant 0 : index
    %c0_4 = arith.constant 0 : index
    %3 = vector.load %arg3[%c0_3, %c0_4] : memref<1x512xf32, #tpu.memory_space<vmem>>, vector<1x512xf32>
    %4 = vector.broadcast %3 : vector<1x512xf32> to vector<8x512xf32>
    %5 = arith.addf %2, %4 : vector<8x512xf32>
    %c0_5 = arith.constant 0 : index
    %c0_6 = arith.constant 0 : index
    %6 = vector.load %arg7[%c0_5, %c0_6] : memref<8x512xf32, #tpu.memory_space<vmem>>, vector<8x512xf32>
    tpu.vector_store %arg7[%c0_5, %c0_6], %5 {strides = array<i32>} : memref<8x512xf32, #tpu.memory_space<vmem>>, vector<8x512xf32>,
    %cst_7 = arith.constant 0.000000e+00 : f32
    %7 = vector.broadcast %cst_7 : f32 to vector<1x128xf32>
    %cst_8 = arith.constant 0.000000e+00 : f32
    %8 = vector.broadcast %cst_8 : f32 to vector<1x128xf32>
    %c0_i32 = arith.constant 0 : i32
    %c8_i32 = arith.constant 8 : i32
    %9 = arith.muli %c0_i32, %c8_i32 : i32
    %10 = tpu.assume_multiple %9, 8 : i32
    %c0_i32_9 = arith.constant 0 : i32
    %11 = arith.addi %10, %c0_i32_9 : i32
    %12 = arith.index_cast %11 : i32 to index
    %c0_10 = arith.constant 0 : index
    %13 = vector.load %arg7[%12, %c0_10] : memref<8x512xf32, #tpu.memory_space<vmem>>, vector<1x512xf32>
    %14 = arith.truncf %7 : vector<1x128xf32> to vector<1x128xbf16>
    %c0_11 = arith.constant 0 : index
    %c0_12 = arith.constant 0 : index
    %15 = vector.load %arg2[%c0_11, %c0_12] : memref<128x512xbf16, #tpu.memory_space<vmem>>, vector<128x512xbf16>
    %cst_13 = arith.constant dense<0.000000e+00> : vector<1x512xf32>
    %16 = tpu.matmul %14, %15, %cst_13 {dimension_numbers = #tpu.dot_dimension_numbers<[1], [0], [0], [1], [0, 0, 1, 1], [], []>} : vector<1x128xbf16>, vector<128x512xbf16>, vector<1x512xf32> -> vector<1x512xf32>
    %17 = arith.addf %13, %16 : vector<1x512xf32>
    %18 = vector.extract_strided_slice %17 {offsets = [0, 0], sizes = [1, 128], strides = [1, 1]} : vector<1x512xf32> to vector<1x128xf32>
    %19 = arith.negf %18 : vector<1x128xf32>
    %20 = math.exp %19 : vector<1x128xf32>
    %cst_14 = arith.constant 1.000000e+00 : f32
    %21 = vector.broadcast %cst_14 : f32 to vector<1x128xf32>
    %22 = arith.addf %21, %20 : vector<1x128xf32>
    %23 = arith.divf %21, %22 : vector<1x128xf32>
    %24 = vector.extract_strided_slice %17 {offsets = [0, 128], sizes = [1, 128], strides = [1, 1]} : vector<1x512xf32> to vector<1x128xf32>
    %25 = arith.negf %24 : vector<1x128xf32>
    %26 = math.exp %25 : vector<1x128xf32>
    %cst_15 = arith.constant 1.000000e+00 : f32
    %27 = vector.broadcast %cst_15 : f32 to vector<1x128xf32>
    %28 = arith.addf %27, %26 : vector<1x128xf32>
    %29 = arith.divf %27, %28 : vector<1x128xf32>
    %30 = vector.extract_strided_slice %17 {offsets = [0, 256], sizes = [1, 128], strides = [1, 1]} : vector<1x512xf32> to vector<1x128xf32>
    %31 = math.tanh %30 : vector<1x128xf32>
    %32 = vector.extract_strided_slice %17 {offsets = [0, 384], sizes = [1, 128], strides = [1, 1]} : vector<1x512xf32> to vector<1x128xf32>
    %33 = arith.negf %32 : vector<1x128xf32>
    %34 = math.exp %33 : vector<1x128xf32>
    %cst_16 = arith.constant 1.000000e+00 : f32
    %35 = vector.broadcast %cst_16 : f32 to vector<1x128xf32>
    %36 = arith.addf %35, %34 : vector<1x128xf32>
    %37 = arith.divf %35, %36 : vector<1x128xf32>
    %38 = arith.mulf %29, %8 : vector<1x128xf32>
    %39 = arith.mulf %23, %31 : vector<1x128xf32>
    %40 = arith.addf %38, %39 : vector<1x128xf32>
    %41 = math.tanh %40 : vector<1x128xf32>
    %42 = arith.mulf %37, %41 : vector<1x128xf32>
    %c1_i32 = arith.constant 1 : i32
    %43 = arith.addi %10, %c1_i32 : i32
    %44 = arith.index_cast %43 : i32 to index
    %c0_17 = arith.constant 0 : index
    %45 = vector.load %arg7[%44, %c0_17] : memref<8x512xf32, #tpu.memory_space<vmem>>, vector<1x512xf32>
    %46 = arith.truncf %42 : vector<1x128xf32> to vector<1x128xbf16>
    %c0_18 = arith.constant 0 : index
    %c0_19 = arith.constant 0 : index
    %47 = vector.load %arg2[%c0_18, %c0_19] : memref<128x512xbf16, #tpu.memory_space<vmem>>, vector<128x512xbf16>
    %cst_20 = arith.constant dense<0.000000e+00> : vector<1x512xf32>
    %48 = tpu.matmul %46, %47, %cst_20 {dimension_numbers = #tpu.dot_dimension_numbers<[1], [0], [0], [1], [0, 0, 1, 1], [], []>} : vector<1x128xbf16>, vector<128x512xbf16>, vector<1x512xf32> -> vector<1x512xf32>
    %49 = arith.addf %45, %48 : vector<1x512xf32>
    %50 = vector.extract_strided_slice %49 {offsets = [0, 0], sizes = [1, 128], strides = [1, 1]} : vector<1x512xf32> to vector<1x128xf32>
    %51 = arith.negf %50 : vector<1x128xf32>
    %52 = math.exp %51 : vector<1x128xf32>
    %cst_21 = arith.constant 1.000000e+00 : f32
    %53 = vector.broadcast %cst_21 : f32 to vector<1x128xf32>
    %54 = arith.addf %53, %52 : vector<1x128xf32>
    %55 = arith.divf %53, %54 : vector<1x128xf32>
    %56 = vector.extract_strided_slice %49 {offsets = [0, 128], sizes = [1, 128], strides = [1, 1]} : vector<1x512xf32> to vector<1x128xf32>
    %57 = arith.negf %56 : vector<1x128xf32>
    %58 = math.exp %57 : vector<1x128xf32>
    %cst_22 = arith.constant 1.000000e+00 : f32
    %59 = vector.broadcast %cst_22 : f32 to vector<1x128xf32>
    %60 = arith.addf %59, %58 : vector<1x128xf32>
    %61 = arith.divf %59, %60 : vector<1x128xf32>
    %62 = vector.extract_strided_slice %49 {offsets = [0, 256], sizes = [1, 128], strides = [1, 1]} : vector<1x512xf32> to vector<1x128xf32>
    %63 = math.tanh %62 : vector<1x128xf32>
    %64 = vector.extract_strided_slice %49 {offsets = [0, 384], sizes = [1, 128], strides = [1, 1]} : vector<1x512xf32> to vector<1x128xf32>
    %65 = arith.negf %64 : vector<1x128xf32>
    %66 = math.exp %65 : vector<1x128xf32>
    %cst_23 = arith.constant 1.000000e+00 : f32
    %67 = vector.broadcast %cst_23 : f32 to vector<1x128xf32>
    %68 = arith.addf %67, %66 : vector<1x128xf32>
    %69 = arith.divf %67, %68 : vector<1x128xf32>
    %70 = arith.mulf %61, %40 : vector<1x128xf32>
    %71 = arith.mulf %55, %63 : vector<1x128xf32>
    %72 = arith.addf %70, %71 : vector<1x128xf32>
    %73 = math.tanh %72 : vector<1x128xf32>
    %74 = arith.mulf %69, %73 : vector<1x128xf32>
    %c2_i32 = arith.constant 2 : i32
    %75 = arith.addi %10, %c2_i32 : i32
    %76 = arith.index_cast %75 : i32 to index
    %c0_24 = arith.constant 0 : index
    %77 = vector.load %arg7[%76, %c0_24] : memref<8x512xf32, #tpu.memory_space<vmem>>, vector<1x512xf32>
    %78 = arith.truncf %74 : vector<1x128xf32> to vector<1x128xbf16>
    %c0_25 = arith.constant 0 : index
    %c0_26 = arith.constant 0 : index
    %79 = vector.load %arg2[%c0_25, %c0_26] : memref<128x512xbf16, #tpu.memory_space<vmem>>, vector<128x512xbf16>
    %cst_27 = arith.constant dense<0.000000e+00> : vector<1x512xf32>
    %80 = tpu.matmul %78, %79, %cst_27 {dimension_numbers = #tpu.dot_dimension_numbers<[1], [0], [0], [1], [0, 0, 1, 1], [], []>} : vector<1x128xbf16>, vector<128x512xbf16>, vector<1x512xf32> -> vector<1x512xf32>
    %81 = arith.addf %77, %80 : vector<1x512xf32>
    %82 = vector.extract_strided_slice %81 {offsets = [0, 0], sizes = [1, 128], strides = [1, 1]} : vector<1x512xf32> to vector<1x128xf32>
    %83 = arith.negf %82 : vector<1x128xf32>
    %84 = math.exp %83 : vector<1x128xf32>
    %cst_28 = arith.constant 1.000000e+00 : f32
    %85 = vector.broadcast %cst_28 : f32 to vector<1x128xf32>
    %86 = arith.addf %85, %84 : vector<1x128xf32>
    %87 = arith.divf %85, %86 : vector<1x128xf32>
    %88 = vector.extract_strided_slice %81 {offsets = [0, 128], sizes = [1, 128], strides = [1, 1]} : vector<1x512xf32> to vector<1x128xf32>
    %89 = arith.negf %88 : vector<1x128xf32>
    %90 = math.exp %89 : vector<1x128xf32>
    %cst_29 = arith.constant 1.000000e+00 : f32
    %91 = vector.broadcast %cst_29 : f32 to vector<1x128xf32>
    %92 = arith.addf %91, %90 : vector<1x128xf32>
    %93 = arith.divf %91, %92 : vector<1x128xf32>
    %94 = vector.extract_strided_slice %81 {offsets = [0, 256], sizes = [1, 128], strides = [1, 1]} : vector<1x512xf32> to vector<1x128xf32>
    %95 = math.tanh %94 : vector<1x128xf32>
    %96 = vector.extract_strided_slice %81 {offsets = [0, 384], sizes = [1, 128], strides = [1, 1]} : vector<1x512xf32> to vector<1x128xf32>
    %97 = arith.negf %96 : vector<1x128xf32>
    %98 = math.exp %97 : vector<1x128xf32>
    %cst_30 = arith.constant 1.000000e+00 : f32
    %99 = vector.broadcast %cst_30 : f32 to vector<1x128xf32>
    %100 = arith.addf %99, %98 : vector<1x128xf32>
    %101 = arith.divf %99, %100 : vector<1x128xf32>
    %102 = arith.mulf %93, %72 : vector<1x128xf32>
    %103 = arith.mulf %87, %95 : vector<1x128xf32>
    %104 = arith.addf %102, %103 : vector<1x128xf32>
    %105 = math.tanh %104 : vector<1x128xf32>
    %106 = arith.mulf %101, %105 : vector<1x128xf32>
    %c3_i32 = arith.constant 3 : i32
    %107 = arith.addi %10, %c3_i32 : i32
    %108 = arith.index_cast %107 : i32 to index
    %c0_31 = arith.constant 0 : index
    %109 = vector.load %arg7[%108, %c0_31] : memref<8x512xf32, #tpu.memory_space<vmem>>, vector<1x512xf32>
    %110 = arith.truncf %106 : vector<1x128xf32> to vector<1x128xbf16>
    %c0_32 = arith.constant 0 : index
    %c0_33 = arith.constant 0 : index
    %111 = vector.load %arg2[%c0_32, %c0_33] : memref<128x512xbf16, #tpu.memory_space<vmem>>, vector<128x512xbf16>
    %cst_34 = arith.constant dense<0.000000e+00> : vector<1x512xf32>
    %112 = tpu.matmul %110, %111, %cst_34 {dimension_numbers = #tpu.dot_dimension_numbers<[1], [0], [0], [1], [0, 0, 1, 1], [], []>} : vector<1x128xbf16>, vector<128x512xbf16>, vector<1x512xf32> -> vector<1x512xf32>
    %113 = arith.addf %109, %112 : vector<1x512xf32>
    %114 = vector.extract_strided_slice %113 {offsets = [0, 0], sizes = [1, 128], strides = [1, 1]} : vector<1x512xf32> to vector<1x128xf32>
    %115 = arith.negf %114 : vector<1x128xf32>
    %116 = math.exp %115 : vector<1x128xf32>
    %cst_35 = arith.constant 1.000000e+00 : f32
    %117 = vector.broadcast %cst_35 : f32 to vector<1x128xf32>
    %118 = arith.addf %117, %116 : vector<1x128xf32>
    %119 = arith.divf %117, %118 : vector<1x128xf32>
    %120 = vector.extract_strided_slice %113 {offsets = [0, 128], sizes = [1, 128], strides = [1, 1]} : vector<1x512xf32> to vector<1x128xf32>
    %121 = arith.negf %120 : vector<1x128xf32>
    %122 = math.exp %121 : vector<1x128xf32>
    %cst_36 = arith.constant 1.000000e+00 : f32
    %123 = vector.broadcast %cst_36 : f32 to vector<1x128xf32>
    %124 = arith.addf %123, %122 : vector<1x128xf32>
    %125 = arith.divf %123, %124 : vector<1x128xf32>
    %126 = vector.extract_strided_slice %113 {offsets = [0, 256], sizes = [1, 128], strides = [1, 1]} : vector<1x512xf32> to vector<1x128xf32>
    %127 = math.tanh %126 : vector<1x128xf32>
    %128 = vector.extract_strided_slice %113 {offsets = [0, 384], sizes = [1, 128], strides = [1, 1]} : vector<1x512xf32> to vector<1x128xf32>
    %129 = arith.negf %128 : vector<1x128xf32>
    %130 = math.exp %129 : vector<1x128xf32>
    %cst_37 = arith.constant 1.000000e+00 : f32
    %131 = vector.broadcast %cst_37 : f32 to vector<1x128xf32>
    %132 = arith.addf %131, %130 : vector<1x128xf32>
    %133 = arith.divf %131, %132 : vector<1x128xf32>
    %134 = arith.mulf %125, %104 : vector<1x128xf32>
    %135 = arith.mulf %119, %127 : vector<1x128xf32>
    %136 = arith.addf %134, %135 : vector<1x128xf32>
    %137 = math.tanh %136 : vector<1x128xf32>
    %138 = arith.mulf %133, %137 : vector<1x128xf32>
    %c4_i32 = arith.constant 4 : i32
    %139 = arith.addi %10, %c4_i32 : i32
    %140 = arith.index_cast %139 : i32 to index
    %c0_38 = arith.constant 0 : index
    %141 = vector.load %arg7[%140, %c0_38] : memref<8x512xf32, #tpu.memory_space<vmem>>, vector<1x512xf32>
    %142 = arith.truncf %138 : vector<1x128xf32> to vector<1x128xbf16>
    %c0_39 = arith.constant 0 : index
    %c0_40 = arith.constant 0 : index
    %143 = vector.load %arg2[%c0_39, %c0_40] : memref<128x512xbf16, #tpu.memory_space<vmem>>, vector<128x512xbf16>
    %cst_41 = arith.constant dense<0.000000e+00> : vector<1x512xf32>
    %144 = tpu.matmul %142, %143, %cst_41 {dimension_numbers = #tpu.dot_dimension_numbers<[1], [0], [0], [1], [0, 0, 1, 1], [], []>} : vector<1x128xbf16>, vector<128x512xbf16>, vector<1x512xf32> -> vector<1x512xf32>
    %145 = arith.addf %141, %144 : vector<1x512xf32>
    %146 = vector.extract_strided_slice %145 {offsets = [0, 0], sizes = [1, 128], strides = [1, 1]} : vector<1x512xf32> to vector<1x128xf32>
    %147 = arith.negf %146 : vector<1x128xf32>
    %148 = math.exp %147 : vector<1x128xf32>
    %cst_42 = arith.constant 1.000000e+00 : f32
    %149 = vector.broadcast %cst_42 : f32 to vector<1x128xf32>
    %150 = arith.addf %149, %148 : vector<1x128xf32>
    %151 = arith.divf %149, %150 : vector<1x128xf32>
    %152 = vector.extract_strided_slice %145 {offsets = [0, 128], sizes = [1, 128], strides = [1, 1]} : vector<1x512xf32> to vector<1x128xf32>
    %153 = arith.negf %152 : vector<1x128xf32>
    %154 = math.exp %153 : vector<1x128xf32>
    %cst_43 = arith.constant 1.000000e+00 : f32
    %155 = vector.broadcast %cst_43 : f32 to vector<1x128xf32>
    %156 = arith.addf %155, %154 : vector<1x128xf32>
    %157 = arith.divf %155, %156 : vector<1x128xf32>
    %158 = vector.extract_strided_slice %145 {offsets = [0, 256], sizes = [1, 128], strides = [1, 1]} : vector<1x512xf32> to vector<1x128xf32>
    %159 = math.tanh %158 : vector<1x128xf32>
    %160 = vector.extract_strided_slice %145 {offsets = [0, 384], sizes = [1, 128], strides = [1, 1]} : vector<1x512xf32> to vector<1x128xf32>
    %161 = arith.negf %160 : vector<1x128xf32>
    %162 = math.exp %161 : vector<1x128xf32>
    %cst_44 = arith.constant 1.000000e+00 : f32
    %163 = vector.broadcast %cst_44 : f32 to vector<1x128xf32>
    %164 = arith.addf %163, %162 : vector<1x128xf32>
    %165 = arith.divf %163, %164 : vector<1x128xf32>
    %166 = arith.mulf %157, %136 : vector<1x128xf32>
    %167 = arith.mulf %151, %159 : vector<1x128xf32>
    %168 = arith.addf %166, %167 : vector<1x128xf32>
    %169 = math.tanh %168 : vector<1x128xf32>
    %170 = arith.mulf %165, %169 : vector<1x128xf32>
    %c5_i32 = arith.constant 5 : i32
    %171 = arith.addi %10, %c5_i32 : i32
    %172 = arith.index_cast %171 : i32 to index
    %c0_45 = arith.constant 0 : index
    %173 = vector.load %arg7[%172, %c0_45] : memref<8x512xf32, #tpu.memory_space<vmem>>, vector<1x512xf32>
    %174 = arith.truncf %170 : vector<1x128xf32> to vector<1x128xbf16>
    %c0_46 = arith.constant 0 : index
    %c0_47 = arith.constant 0 : index
    %175 = vector.load %arg2[%c0_46, %c0_47] : memref<128x512xbf16, #tpu.memory_space<vmem>>, vector<128x512xbf16>
    %cst_48 = arith.constant dense<0.000000e+00> : vector<1x512xf32>
    %176 = tpu.matmul %174, %175, %cst_48 {dimension_numbers = #tpu.dot_dimension_numbers<[1], [0], [0], [1], [0, 0, 1, 1], [], []>} : vector<1x128xbf16>, vector<128x512xbf16>, vector<1x512xf32> -> vector<1x512xf32>
    %177 = arith.addf %173, %176 : vector<1x512xf32>
    %178 = vector.extract_strided_slice %177 {offsets = [0, 0], sizes = [1, 128], strides = [1, 1]} : vector<1x512xf32> to vector<1x128xf32>
    %179 = arith.negf %178 : vector<1x128xf32>
    %180 = math.exp %179 : vector<1x128xf32>
    %cst_49 = arith.constant 1.000000e+00 : f32
    %181 = vector.broadcast %cst_49 : f32 to vector<1x128xf32>
    %182 = arith.addf %181, %180 : vector<1x128xf32>
    %183 = arith.divf %181, %182 : vector<1x128xf32>
    %184 = vector.extract_strided_slice %177 {offsets = [0, 128], sizes = [1, 128], strides = [1, 1]} : vector<1x512xf32> to vector<1x128xf32>
    %185 = arith.negf %184 : vector<1x128xf32>
    %186 = math.exp %185 : vector<1x128xf32>
    %cst_50 = arith.constant 1.000000e+00 : f32
    %187 = vector.broadcast %cst_50 : f32 to vector<1x128xf32>
    %188 = arith.addf %187, %186 : vector<1x128xf32>
    %189 = arith.divf %187, %188 : vector<1x128xf32>
    %190 = vector.extract_strided_slice %177 {offsets = [0, 256], sizes = [1, 128], strides = [1, 1]} : vector<1x512xf32> to vector<1x128xf32>
    %191 = math.tanh %190 : vector<1x128xf32>
    %192 = vector.extract_strided_slice %177 {offsets = [0, 384], sizes = [1, 128], strides = [1, 1]} : vector<1x512xf32> to vector<1x128xf32>
    %193 = arith.negf %192 : vector<1x128xf32>
    %194 = math.exp %193 : vector<1x128xf32>
    %cst_51 = arith.constant 1.000000e+00 : f32
    %195 = vector.broadcast %cst_51 : f32 to vector<1x128xf32>
    %196 = arith.addf %195, %194 : vector<1x128xf32>
    %197 = arith.divf %195, %196 : vector<1x128xf32>
    %198 = arith.mulf %189, %168 : vector<1x128xf32>
    %199 = arith.mulf %183, %191 : vector<1x128xf32>
    %200 = arith.addf %198, %199 : vector<1x128xf32>
    %201 = math.tanh %200 : vector<1x128xf32>
    %202 = arith.mulf %197, %201 : vector<1x128xf32>
    %c6_i32 = arith.constant 6 : i32
    %203 = arith.addi %10, %c6_i32 : i32
    %204 = arith.index_cast %203 : i32 to index
    %c0_52 = arith.constant 0 : index
    %205 = vector.load %arg7[%204, %c0_52] : memref<8x512xf32, #tpu.memory_space<vmem>>, vector<1x512xf32>
    %206 = arith.truncf %202 : vector<1x128xf32> to vector<1x128xbf16>
    %c0_53 = arith.constant 0 : index
    %c0_54 = arith.constant 0 : index
    %207 = vector.load %arg2[%c0_53, %c0_54] : memref<128x512xbf16, #tpu.memory_space<vmem>>, vector<128x512xbf16>
    %cst_55 = arith.constant dense<0.000000e+00> : vector<1x512xf32>
    %208 = tpu.matmul %206, %207, %cst_55 {dimension_numbers = #tpu.dot_dimension_numbers<[1], [0], [0], [1], [0, 0, 1, 1], [], []>} : vector<1x128xbf16>, vector<128x512xbf16>, vector<1x512xf32> -> vector<1x512xf32>
    %209 = arith.addf %205, %208 : vector<1x512xf32>
    %210 = vector.extract_strided_slice %209 {offsets = [0, 0], sizes = [1, 128], strides = [1, 1]} : vector<1x512xf32> to vector<1x128xf32>
    %211 = arith.negf %210 : vector<1x128xf32>
    %212 = math.exp %211 : vector<1x128xf32>
    %cst_56 = arith.constant 1.000000e+00 : f32
    %213 = vector.broadcast %cst_56 : f32 to vector<1x128xf32>
    %214 = arith.addf %213, %212 : vector<1x128xf32>
    %215 = arith.divf %213, %214 : vector<1x128xf32>
    %216 = vector.extract_strided_slice %209 {offsets = [0, 128], sizes = [1, 128], strides = [1, 1]} : vector<1x512xf32> to vector<1x128xf32>
    %217 = arith.negf %216 : vector<1x128xf32>
    %218 = math.exp %217 : vector<1x128xf32>
    %cst_57 = arith.constant 1.000000e+00 : f32
    %219 = vector.broadcast %cst_57 : f32 to vector<1x128xf32>
    %220 = arith.addf %219, %218 : vector<1x128xf32>
    %221 = arith.divf %219, %220 : vector<1x128xf32>
    %222 = vector.extract_strided_slice %209 {offsets = [0, 256], sizes = [1, 128], strides = [1, 1]} : vector<1x512xf32> to vector<1x128xf32>
    %223 = math.tanh %222 : vector<1x128xf32>
    %224 = vector.extract_strided_slice %209 {offsets = [0, 384], sizes = [1, 128], strides = [1, 1]} : vector<1x512xf32> to vector<1x128xf32>
    %225 = arith.negf %224 : vector<1x128xf32>
    %226 = math.exp %225 : vector<1x128xf32>
    %cst_58 = arith.constant 1.000000e+00 : f32
    %227 = vector.broadcast %cst_58 : f32 to vector<1x128xf32>
    %228 = arith.addf %227, %226 : vector<1x128xf32>
    %229 = arith.divf %227, %228 : vector<1x128xf32>
    %230 = arith.mulf %221, %200 : vector<1x128xf32>
    %231 = arith.mulf %215, %223 : vector<1x128xf32>
    %232 = arith.addf %230, %231 : vector<1x128xf32>
    %233 = math.tanh %232 : vector<1x128xf32>
    %234 = arith.mulf %229, %233 : vector<1x128xf32>
    %c7_i32 = arith.constant 7 : i32
    %235 = arith.addi %10, %c7_i32 : i32
    %236 = arith.index_cast %235 : i32 to index
    %c0_59 = arith.constant 0 : index
    %237 = vector.load %arg7[%236, %c0_59] : memref<8x512xf32, #tpu.memory_space<vmem>>, vector<1x512xf32>
    %238 = arith.truncf %234 : vector<1x128xf32> to vector<1x128xbf16>
    %c0_60 = arith.constant 0 : index
    %c0_61 = arith.constant 0 : index
    %239 = vector.load %arg2[%c0_60, %c0_61] : memref<128x512xbf16, #tpu.memory_space<vmem>>, vector<128x512xbf16>
    %cst_62 = arith.constant dense<0.000000e+00> : vector<1x512xf32>
    %240 = tpu.matmul %238, %239, %cst_62 {dimension_numbers = #tpu.dot_dimension_numbers<[1], [0], [0], [1], [0, 0, 1, 1], [], []>} : vector<1x128xbf16>, vector<128x512xbf16>, vector<1x512xf32> -> vector<1x512xf32>
    %241 = arith.addf %237, %240 : vector<1x512xf32>
    %242 = vector.extract_strided_slice %241 {offsets = [0, 0], sizes = [1, 128], strides = [1, 1]} : vector<1x512xf32> to vector<1x128xf32>
    %243 = arith.negf %242 : vector<1x128xf32>
    %244 = math.exp %243 : vector<1x128xf32>
    %cst_63 = arith.constant 1.000000e+00 : f32
    %245 = vector.broadcast %cst_63 : f32 to vector<1x128xf32>
    %246 = arith.addf %245, %244 : vector<1x128xf32>
    %247 = arith.divf %245, %246 : vector<1x128xf32>
    %248 = vector.extract_strided_slice %241 {offsets = [0, 128], sizes = [1, 128], strides = [1, 1]} : vector<1x512xf32> to vector<1x128xf32>
    %249 = arith.negf %248 : vector<1x128xf32>
    %250 = math.exp %249 : vector<1x128xf32>
    %cst_64 = arith.constant 1.000000e+00 : f32
    %251 = vector.broadcast %cst_64 : f32 to vector<1x128xf32>
    %252 = arith.addf %251, %250 : vector<1x128xf32>
    %253 = arith.divf %251, %252 : vector<1x128xf32>
    %254 = vector.extract_strided_slice %241 {offsets = [0, 256], sizes = [1, 128], strides = [1, 1]} : vector<1x512xf32> to vector<1x128xf32>
    %255 = math.tanh %254 : vector<1x128xf32>
    %256 = vector.extract_strided_slice %241 {offsets = [0, 384], sizes = [1, 128], strides = [1, 1]} : vector<1x512xf32> to vector<1x128xf32>
    %257 = arith.negf %256 : vector<1x128xf32>
    %258 = math.exp %257 : vector<1x128xf32>
    %cst_65 = arith.constant 1.000000e+00 : f32
    %259 = vector.broadcast %cst_65 : f32 to vector<1x128xf32>
    %260 = arith.addf %259, %258 : vector<1x128xf32>
    %261 = arith.divf %259, %260 : vector<1x128xf32>
    %262 = arith.mulf %253, %232 : vector<1x128xf32>
    %263 = arith.mulf %247, %255 : vector<1x128xf32>
    %264 = arith.addf %262, %263 : vector<1x128xf32>
    %265 = math.tanh %264 : vector<1x128xf32>
    %266 = arith.mulf %261, %265 : vector<1x128xf32>
    %267 = tpu.concatenate %42, %74, %106, %138, %170, %202, %234, %266 in 0 : vector<1x128xf32>, vector<1x128xf32>, vector<1x128xf32>, vector<1x128xf32>, vector<1x128xf32>, vector<1x128xf32>, vector<1x128xf32>, vector<1x128xf32> -> vector<8x128xf32>
    %268 = arith.index_cast %10 : i32 to index
    %c0_66 = arith.constant 0 : index
    %269 = vector.load %arg8[%268, %c0_66] : memref<8x128xf32, #tpu.memory_space<vmem>>, vector<8x128xf32>
    tpu.vector_store %arg8[%268, %c0_66], %267 {strides = array<i32>} : memref<8x128xf32, #tpu.memory_space<vmem>>, vector<8x128xf32>,
    %c1_i32_67 = arith.constant 1 : i32
    %c0_68 = arith.constant 0 : index
    %c0_69 = arith.constant 0 : index
    %270 = vector.load %arg8[%c0_68, %c0_69] : memref<8x128xf32, #tpu.memory_space<vmem>>, vector<8x128xf32>
    %271 = arith.truncf %270 : vector<8x128xf32> to vector<8x128xbf16>
    %c0_70 = arith.constant 0 : index
    %c0_71 = arith.constant 0 : index
    %272 = vector.load %arg4[%c0_70, %c0_71] : memref<128x128xbf16, #tpu.memory_space<vmem>>, vector<128x128xbf16>
    %cst_72 = arith.constant dense<0.000000e+00> : vector<8x128xf32>
    %273 = tpu.matmul %271, %272, %cst_72 {dimension_numbers = #tpu.dot_dimension_numbers<[1], [0], [0], [1], [0, 0, 1, 1], [], []>} : vector<8x128xbf16>, vector<128x128xbf16>, vector<8x128xf32> -> vector<8x128xf32>
    %c0_73 = arith.constant 0 : index
    %c0_74 = arith.constant 0 : index
    %274 = vector.load %arg5[%c0_73, %c0_74] : memref<1x128xf32, #tpu.memory_space<vmem>>, vector<1x128xf32>
    %275 = vector.broadcast %274 : vector<1x128xf32> to vector<8x128xf32>
    %276 = arith.addf %273, %275 : vector<8x128xf32>
    %cst_75 = arith.constant dense<0xFF800000> : vector<8xf32>
    %277 = vector.multi_reduction <maximumf>, %276, %cst_75 [1] : vector<8x128xf32> to vector<8xf32>
    %278 = vector.shape_cast %277 : vector<8xf32> to vector<8x1xf32>
    %279 = vector.broadcast %278 : vector<8x1xf32> to vector<8x128xf32>
    %280 = arith.subf %276, %279 : vector<8x128xf32>
    %281 = math.exp %280 : vector<8x128xf32>
    %cst_76 = arith.constant dense<0.000000e+00> : vector<8xf32>
    %282 = vector.multi_reduction <add>, %281, %cst_76 [1] : vector<8x128xf32> to vector<8xf32>
    %283 = vector.shape_cast %282 : vector<8xf32> to vector<8x1xf32>
    %284 = tpu.reciprocal %283 {approx = true} : vector<8x1xf32> -> vector<8x1xf32>
    %285 = vector.broadcast %284 : vector<8x1xf32> to vector<8x128xf32>
    %286 = arith.mulf %281, %285 : vector<8x128xf32>
    %c0_77 = arith.constant 0 : index
    %c0_78 = arith.constant 0 : index
    %287 = vector.load %arg6[%c0_77, %c0_78] : memref<8x128xf32, #tpu.memory_space<vmem>>, vector<8x128xf32>
    tpu.vector_store %arg6[%c0_77, %c0_78], %286 {strides = array<i32>} : memref<8x128xf32, #tpu.memory_space<vmem>>, vector<8x128xf32>,
    return
  }
}

</mosaic_0001>

<bundles_post_ra>
// kernel: tpu_custom_call.1
= control target key start
LH: loop header
LB: loop body
LE: loop exit
PB: predicated region body
PF: predicated region fallthrough
CT: control target
= control target key end

     0   :  { %11 = vsyncpa [#allocation5], 0  ;;  %s2729_s0 = inlined_call_operand.hbm [shape: bf16[8,16], index: 0, kind: input, shape index: {}]   ;;  %s2730_s1 = inlined_call_operand.hbm [shape: bf16[16,512], index: 1, kind: input, shape index: {}]   ;;  %s2731_s2 = inlined_call_operand.hbm [shape: bf16[128,512], index: 2, kind: input, shape index: {}]   ;;  %s2732_s3 = inlined_call_operand.hbm [shape: f32[1,512], index: 3, kind: input, shape index: {}]   ;;  %s2733_s4 = inlined_call_operand.hbm [shape: bf16[128,128], index: 4, kind: input, shape index: {}]   ;;  %s2734_s5 = inlined_call_operand.vmem [shape: f32[1,128], index: 5, kind: input, shape index: {}]   ;;  %s2735_s6 = inlined_call_operand.hbm [shape: f32[8,128], index: 6, kind: output, shape index: {}]  }
   0x1   :  { %12 = vsyncpa [#allocation8], 0 }
   0x2   :  { %13 = vsyncpa [#allocation11], 0  ;;  %s30_s23 = sshll.u32 %s2730_s1, 4  ;;  %s31_s23 = int_to_ptr.hbm [resolvable:$true] %s30_s23 }
   0x3   :  { %14 = vsyncpa [#allocation6], 0  ;;  %s2253_s24 = smov [#allocation7]   ;;  %s57_s28 = sshll.u32 %s2732_s3, 4  ;;  %s58_s28 = int_to_ptr.hbm [resolvable:$true] %s57_s28 }
   0x4   :  { %s32_s25 = sshll.u32 %s2253_s24, 4  ;;  %s2254_s29 = smov 256   ;;  %s33_s25 = int_to_ptr.vmem [resolvable:$true] %s32_s25 }
   0x5   :  { %s2255_s30 = smov 16   ;;  %s2256_s7 = smov [#allocation10]  }
   0x6   :  { %38 = dma.hbm_to_vmem [thread:$0]  %s31_s23, 512, %s33_s25, [#allocation8], %s2254_s29, %s2254_s29, %s2255_s30  }
   0x7   :  { %s59_s8 = sshll.u32 %s2256_s7, 4  ;;  %s20_s11 = sshll.u32 %s2729_s0, 4  ;;  %s60_s8 = int_to_ptr.vmem [resolvable:$true] %s59_s8  ;;  %s21_s11 = int_to_ptr.hbm [resolvable:$true] %s20_s11 }
   0x8   :  { %62 = dma.hbm_to_vmem [thread:$0]  %s58_s28, 64, %s60_s8, [#allocation11]  }
   0x9   :  { %s43_s13 = sshll.u32 %s2731_s2, 4  ;;  %s2257_s14 = smov [#allocation4]   ;;  %s44_s13 = int_to_ptr.hbm [resolvable:$true] %s43_s13 }
   0xa   :  { %s22_s15 = sshll.u32 %s2257_s14, 4  ;;  %s2258_s3 = smov [#allocation9]   ;;  %s23_s15 = int_to_ptr.vmem [resolvable:$true] %s22_s15 }
   0xb   :  { %25 = dma.hbm_to_vmem [thread:$0]  %s21_s11, 64, %s23_s15, [#allocation5]  }
   0xc   :  { %s45_s16 = sshll.u32 %s2258_s3, 4  ;;  %s67_s19 = sshll.u32 %s2733_s4, 4  ;;  %s46_s16 = int_to_ptr.vmem [resolvable:$true] %s45_s16  ;;  %s68_s19 = int_to_ptr.hbm [resolvable:$true] %s67_s19 }
   0xd   :  { %51 = dma.hbm_to_vmem [thread:$0]  %s44_s13, 4096, %s46_s16, [#allocation8], %s2254_s29, %s2254_s29, %s2255_s30  }
   0xe   :  { %s2259_s0 = smov [#allocation12]   ;;  %s2260_s21 = smov 64  }
   0xf   :  { %s69_s20 = sshll.u32 %s2259_s0, 4  ;;  %s2261_s22 = smov 4   ;;  %s70_s20 = int_to_ptr.vmem [resolvable:$true] %s69_s20 }
  0x10   :  { %75 = dma.hbm_to_vmem [thread:$0]  %s68_s19, 1024, %s70_s20, [#allocation11], %s2260_s21, %s2260_s21, %s2261_s22  }
  0x11   :  { %2245 = dma.done.wait [#allocation5], 64  }
  0x12   :  { %2246 = vsyncadd [#allocation5], 4294967232 }
  0x13   :  { %2247 = dma.done.wait [#allocation8], 4608  }
  0x14   :  { %2248 = vsyncadd [#allocation8], 4294962688 }
  0x15   :  { %2249 = dma.done.wait [#allocation11], 1088  }
  0x16   :  { %2250 = vsyncadd [#allocation11], 4294966208  ;;  %vm134_vm0 = vcmask 130048   ;;  %v1711_v0 = vld [vmem:[#allocation7] sm:$0xf]  ;;  %vm449_vm1 = vcmask 1040384  }
  0x17   :  { %v1915_v1 = vld [vmem:[#allocation7 + $0xc] sm:$0xf0]  ;;  %v1719_v2 = vld [vmem:[#allocation7 + $0x8] sm:$0xf]  ;;  %v1916_v4 = vld [vmem:[#allocation7 + $0x14] sm:$0xf0] }
  0x18   :  { %v1712_v3 = vor.u32 %v1915_v1, %v1711_v0  ;;  %v1914_v5 = vld [vmem:[#allocation7 + $0xc] sm:$0xf]  ;;  %v1721_v6 = vld [vmem:[#allocation7 + $0x18] sm:$0xf0]  ;;  %v1720_v7 = vor.u32 %v1916_v4, %v1719_v2  ;;  %v1843_v9 = vld [vmem:[#allocation9 + $0xe0] sm:$0xf] }
  0x19   :  { %v1724_v8 = vor.u32 %v1914_v5, %v1721_v6  ;;  %v1947_v10 = vld [vmem:[#allocation9 + $0xec] sm:$0xf0]  ;;  %v1851_v11 = vld [vmem:[#allocation9 + $0xe8] sm:$0xf]  ;;  %v1948_v13 = vld [vmem:[#allocation9 + $0xf4] sm:$0xf0] }
  0x1a   :  { %145 = vmatpush.bf16.msra.mxu1 %v1712_v3  ;;  %v2314_v12 = vor.u32 %v1947_v10, %v1843_v9  ;;  %v1946_v14 = vld [vmem:[#allocation9 + $0xec] sm:$0xf]  ;;  %v1853_v15 = vld [vmem:[#allocation9 + $0xf8] sm:$0xf0]  ;;  %171 = vmatpush.bf16.msra.mxu2 %v1720_v7  ;;  %v2316_v16 = vor.u32 %v1948_v13, %v1851_v11  ;;  %v1913_v19 = vld [vmem:[#allocation7 + $0x4] sm:$0xf] }
  0x1b   :  { %184 = vmatpush.bf16.msra.mxu3 %v1724_v8  ;;  %v2318_v17 = vor.u32 %v1946_v14, %v1853_v15  ;;  %v2320_v18 = vld [vmem:[#allocation4] sm:$0xf]  ;;  %v1713_v20 = vld [vmem:[#allocation7 + $0x10] sm:$0xf0]  ;;  %v1945_v22 = vld [vmem:[#allocation9 + $0xe4] sm:$0xf] }
  0x1c   :  { %390 = vmatpush.bf16.msra.mxu0 %v2314_v12  ;;  %v1716_v21 = vor.u32 %v1913_v19, %v1713_v20  ;;  %v1845_v23 = vld [vmem:[#allocation9 + $0xf0] sm:$0xf0]  ;;  %v1827_v24 = vld [vmem:[#allocation9 + $0xc0] sm:$0xf]  ;;  %v1943_v26 = vld [vmem:[#allocation9 + $0xcc] sm:$0xf0] }
  0x1d   :  { %v2325_v25 = vor.u32 %v1945_v22, %v1845_v23  ;;  %v1835_v27 = vld [vmem:[#allocation9 + $0xc8] sm:$0xf]  ;;  %v1944_v28 = vld [vmem:[#allocation9 + $0xd4] sm:$0xf0]  ;;  %1725 = vmatmul.msk.bf16.vlgmr.msra.gmra.mxu1 %vm134_vm0, %v2320_v18  ;;  %v2329_v29 = vor.u32 %v1943_v26, %v1827_v24  ;;  %v1942_v31 = vld [vmem:[#allocation9 + $0xcc] sm:$0xf]  ;;  %1727 = vmatmul.msk.bf16.vlgmr.msra.gmra.mxu2 %vm134_vm0, %v2320_v18 }
  0x1e   :  { %416 = vmatpush.bf16.msrb.mxu2 %v2316_v16  ;;  %v2331_v30 = vor.u32 %v1944_v28, %v1835_v27  ;;  %v1837_v32 = vld [vmem:[#allocation9 + $0xd8] sm:$0xf0]  ;;  %v1941_v33 = vld [vmem:[#allocation9 + $0xc4] sm:$0xf]  ;;  %158 = vmatpush.bf16.msrb.mxu1 %v1716_v21  ;;  %v1829_v35 = vld [vmem:[#allocation9 + $0xd0] sm:$0xf0] }
  0x1f   :  { %429 = vmatpush.bf16.msrb.mxu3 %v2318_v17  ;;  %v2335_v34 = vor.u32 %v1942_v31, %v1837_v32  ;;  %v1811_v36 = vld [vmem:[#allocation9 + $0xa0] sm:$0xf]  ;;  %v1939_v37 = vld [vmem:[#allocation9 + $0xac] sm:$0xf0]  ;;  %v2341_v38 = vor.u32 %v1941_v33, %v1829_v35  ;;  %v1819_v40 = vld [vmem:[#allocation9 + $0xa8] sm:$0xf] }
  0x20   :  { %1728 = vmatmul.msk.bf16.vlgmr.msra.gmra.mxu3 %vm134_vm0, %v2320_v18  ;;  %391 = vmatpush.bf16.msra.mxu0 %v2329_v29  ;;  %v2343_v39 = vor.u32 %v1939_v37, %v1811_v36  ;;  %v1940_v41 = vld [vmem:[#allocation9 + $0xb4] sm:$0xf0]  ;;  %v1938_v42 = vld [vmem:[#allocation9 + $0xac] sm:$0xf]  ;;  %v1821_v44 = vld [vmem:[#allocation9 + $0xb8] sm:$0xf0] }
  0x21   :  { %v2347_v43 = vor.u32 %v1940_v41, %v1819_v40  ;;  %v1937_v45 = vld [vmem:[#allocation9 + $0xa4] sm:$0xf]  ;;  %v1813_v46 = vld [vmem:[#allocation9 + $0xb0] sm:$0xf0]  ;;  %v2349_v47 = vor.u32 %v1938_v42, %v1821_v44  ;;  %v1795_v48 = vld [vmem:[#allocation9 + $0x80] sm:$0xf] }
  0x22   :  { %403 = vmatpush.bf16.msra.mxu1 %v2325_v25  ;;  %417 = vmatpush.bf16.msrb.mxu2 %v2331_v30  ;;  %v1935_v49 = vld [vmem:[#allocation9 + $0x8c] sm:$0xf0]  ;;  %v1803_v50 = vld [vmem:[#allocation9 + $0x88] sm:$0xf]  ;;  %v1936_v51 = vld [vmem:[#allocation9 + $0x94] sm:$0xf0]  ;;  %v2353_v54 = vor.u32 %v1937_v45, %v1813_v46 }
  0x23   :  { %430 = vmatpush.bf16.msrb.mxu3 %v2335_v34  ;;  %v1934_v52 = vld [vmem:[#allocation9 + $0x8c] sm:$0xf]  ;;  %v1805_v53 = vld [vmem:[#allocation9 + $0x98] sm:$0xf0]  ;;  %v2355_v55 = vor.u32 %v1935_v49, %v1795_v48  ;;  %v1933_v56 = vld [vmem:[#allocation9 + $0x84] sm:$0xf]  ;;  %v2359_v58 = vor.u32 %v1936_v51, %v1803_v50 }
  0x24   :  { %392 = vmatpush.bf16.msra.mxu0 %v2343_v39  ;;  %v1797_v57 = vld [vmem:[#allocation9 + $0x90] sm:$0xf0]  ;;  %v2361_v59 = vor.u32 %v1934_v52, %v1805_v53  ;;  %v1779_v60 = vld [vmem:[#allocation9 + $0x60] sm:$0xf]  ;;  %v1931_v61 = vld [vmem:[#allocation9 + $0x6c] sm:$0xf0] }
  0x25   :  { %v1787_v62 = vld [vmem:[#allocation9 + $0x68] sm:$0xf]  ;;  %v1932_v63 = vld [vmem:[#allocation9 + $0x74] sm:$0xf0]  ;;  %v1930_v0 = vld [vmem:[#allocation9 + $0x6c] sm:$0xf]  ;;  %v2365_v2 = vor.u32 %v1933_v56, %v1797_v57  ;;  %v2367_v3 = vor.u32 %v1931_v61, %v1779_v60 }
  0x26   :  { %404 = vmatpush.bf16.msra.mxu1 %v2341_v38  ;;  %418 = vmatpush.bf16.msrb.mxu2 %v2347_v43  ;;  %v1789_v1 = vld [vmem:[#allocation9 + $0x78] sm:$0xf0]  ;;  %v1929_v4 = vld [vmem:[#allocation9 + $0x64] sm:$0xf]  ;;  %v1781_v5 = vld [vmem:[#allocation9 + $0x70] sm:$0xf0]  ;;  %v2371_v6 = vor.u32 %v1932_v63, %v1787_v62 }
  0x27   :  { %431 = vmatpush.bf16.msrb.mxu3 %v2349_v47  ;;  %v2373_v7 = vor.u32 %v1930_v0, %v1789_v1  ;;  %v1763_v8 = vld [vmem:[#allocation9 + $0x40] sm:$0xf]  ;;  %v1927_v9 = vld [vmem:[#allocation9 + $0x4c] sm:$0xf0]  ;;  %v1771_v10 = vld [vmem:[#allocation9 + $0x48] sm:$0xf]  ;;  %v2377_v15 = vor.u32 %v1929_v4, %v1781_v5 }
  0x28   :  { %393 = vmatpush.bf16.msra.mxu0 %v2355_v55  ;;  %v1928_v11 = vld [vmem:[#allocation9 + $0x54] sm:$0xf0]  ;;  %v1926_v13 = vld [vmem:[#allocation9 + $0x4c] sm:$0xf]  ;;  %v1773_v14 = vld [vmem:[#allocation9 + $0x58] sm:$0xf0]  ;;  %v2379_v19 = vor.u32 %v1927_v9, %v1763_v8 }
  0x29   :  { %v1925_v20 = vld [vmem:[#allocation9 + $0x44] sm:$0xf]  ;;  %v1765_v21 = vld [vmem:[#allocation9 + $0x50] sm:$0xf0]  ;;  %v2383_v22 = vor.u32 %v1928_v11, %v1771_v10  ;;  %v2385_v23 = vor.u32 %v1926_v13, %v1773_v14  ;;  %v1747_v24 = vld [vmem:[#allocation9 + $0x20] sm:$0xf] }
  0x2a   :  { %405 = vmatpush.bf16.msra.mxu1 %v2353_v54  ;;  %419 = vmatpush.bf16.msrb.mxu2 %v2359_v58  ;;  %v1923_v26 = vld [vmem:[#allocation9 + $0x2c] sm:$0xf0]  ;;  %v1755_v27 = vld [vmem:[#allocation9 + $0x28] sm:$0xf]  ;;  %v1924_v28 = vld [vmem:[#allocation9 + $0x34] sm:$0xf0]  ;;  %v2391_v33 = vor.u32 %v1925_v20, %v1765_v21 }
  0x2b   :  { %432 = vmatpush.bf16.msrb.mxu3 %v2361_v59  ;;  %v1922_v31 = vld [vmem:[#allocation9 + $0x2c] sm:$0xf]  ;;  %v1757_v32 = vld [vmem:[#allocation9 + $0x38] sm:$0xf0]  ;;  %v2393_v35 = vor.u32 %v1923_v26, %v1747_v24  ;;  %v1921_v36 = vld [vmem:[#allocation9 + $0x24] sm:$0xf]  ;;  %v2397_v40 = vor.u32 %v1924_v28, %v1755_v27 }
  0x2c   :  { %394 = vmatpush.bf16.msra.mxu0 %v2367_v3  ;;  %v1749_v37 = vld [vmem:[#allocation9 + $0x30] sm:$0xf0]  ;;  %v1731_v41 = vld [vmem:[#allocation9] sm:$0xf]  ;;  %v1919_v42 = vld [vmem:[#allocation9 + $0xc] sm:$0xf0] }
  0x2d   :  { %1726 = vmatmul.msk.bf16.vlgmr.msrb.gmra.mxu1 %vm134_vm0, %v2320_v18  ;;  %v2399_v18 = vor.u32 %v1922_v31, %v1757_v32  ;;  %v1739_v44 = vld [vmem:[#allocation9 + $0x8] sm:$0xf]  ;;  %v1920_v45 = vld [vmem:[#allocation9 + $0x14] sm:$0xf0]  ;;  %v1918_v46 = vld [vmem:[#allocation9 + $0xc] sm:$0xf]  ;;  %v2403_v49 = vor.u32 %v1921_v36, %v1749_v37  ;;  %v2405_v50 = vor.u32 %v1919_v42, %v1731_v41 }
  0x2e   :  { %406 = vmatpush.bf16.msra.mxu1 %v2365_v2  ;;  %420 = vmatpush.bf16.msrb.mxu2 %v2371_v6  ;;  %v1741_v48 = vld [vmem:[#allocation9 + $0x18] sm:$0xf0]  ;;  %v2409_v51 = vor.u32 %v1920_v45, %v1739_v44  ;;  %v1917_v53 = vld [vmem:[#allocation9 + $0x4] sm:$0xf]  ;;  %v1733_v56 = vld [vmem:[#allocation9 + $0x10] sm:$0xf0] }
  0x2f   :  { %433 = vmatpush.bf16.msrb.mxu3 %v2373_v7  ;;  %v2411_v52 = vor.u32 %v1918_v46, %v1741_v48  ;;  %v2415_v57 = vor.u32 %v1917_v53, %v1733_v56  ;;  %v2262_v60 = vmov 0   ;;  %v104_v61 = vld [vmem:[#allocation10] sm:$0xf]  ;;  %vm451_vm2 = vcmask 1042434   ;;  %s2263_s23 = smov [#allocation13]   ;;  %s1676_s27 = sshll.u32 %s2735_s6, 4  ;;  %s1677_s27 = int_to_ptr.hbm [resolvable:$true] %s1676_s27 }
  0x30   :  { %395 = vmatpush.bf16.msra.mxu0 %v2379_v19  ;;  %v106_v62 = vperm.slane %v104_v61, 0  ;;  %v108_v1 = vperm.slane %v104_v61, 2  ;;  %v109_v4 = vperm.slane %v104_v61, 3  ;;  %v107_v13 = vperm.slane %v104_v61, 1  ;;  %s1674_s24 = sshll.u32 %s2263_s23, 4  ;;  %s1675_s24 = int_to_ptr.vmem [resolvable:$true] %s1674_s24 }
  0x31   :  { %vm453_vm3 = vcmask 1041408  }
  0x32   :  { %407 = vmatpush.bf16.msra.mxu1 %v2377_v15  ;;  %421 = vmatpush.bf16.msrb.mxu2 %v2383_v22 }
  0x33   :  { %434 = vmatpush.bf16.msrb.mxu3 %v2385_v23 }
  0x34   :  { %396 = vmatpush.bf16.msra.mxu0 %v2393_v35 }
  0x36   :  { %408 = vmatpush.bf16.msra.mxu1 %v2391_v33  ;;  %422 = vmatpush.bf16.msrb.mxu2 %v2397_v40 }
  0x37   :  { %435 = vmatpush.bf16.msrb.mxu3 %v2399_v18 }
  0x38   :  { %397 = vmatpush.bf16.msra.mxu0 %v2405_v50 }
  0x3a   :  { %409 = vmatpush.bf16.msra.mxu1 %v2403_v49  ;;  %423 = vmatpush.bf16.msrb.mxu2 %v2409_v51 }
  0x3b   :  { %436 = vmatpush.bf16.msrb.mxu3 %v2411_v52  ;;  %398 = vmatmul.bf16.vlgmr.msra.gmra.mxu0 %v2262_v60 }
  0x3c   :  { %538 = vmatpush.bf16.msrb.mxu0 %v2314_v12 }
  0x3d   :  { %424 = vmatmul.bf16.vlgmr.msrb.gmra.mxu2 %v2262_v60 }
  0x3e   :  { %564 = vmatpush.bf16.msra.mxu2 %v2316_v16  ;;  %410 = vmatpush.bf16.msra.mxu1 %v2415_v57 }
  0x3f   :  { %577 = vmatpush.bf16.msra.mxu3 %v2318_v17 }
  0x40   :  { %437 = vmatmul.bf16.vlgmr.msrb.gmra.mxu3 %v2262_v60  ;;  %539 = vmatpush.bf16.msrb.mxu0 %v2329_v29 }
  0x41   :  { %411 = vmatmul.bf16.vlgmr.msra.gmra.mxu1 %v2262_v60 }
  0x42   :  { %551 = vmatpush.bf16.msrb.mxu1 %v2325_v25  ;;  %565 = vmatpush.bf16.msra.mxu2 %v2331_v30 }
  0x43   :  { %578 = vmatpush.bf16.msra.mxu3 %v2335_v34 }
  0x44   :  { %540 = vmatpush.bf16.msrb.mxu0 %v2343_v39 }
  0x46   :  { %552 = vmatpush.bf16.msrb.mxu1 %v2341_v38  ;;  %566 = vmatpush.bf16.msra.mxu2 %v2347_v43 }
  0x47   :  { %579 = vmatpush.bf16.msra.mxu3 %v2349_v47 }
  0x48   :  { %541 = vmatpush.bf16.msrb.mxu0 %v2355_v55 }
  0x4a   :  { %553 = vmatpush.bf16.msrb.mxu1 %v2353_v54  ;;  %567 = vmatpush.bf16.msra.mxu2 %v2359_v58 }
  0x4b   :  { %580 = vmatpush.bf16.msra.mxu3 %v2361_v59 }
  0x4c   :  { %542 = vmatpush.bf16.msrb.mxu0 %v2367_v3 }
  0x4e   :  { %554 = vmatpush.bf16.msrb.mxu1 %v2365_v2  ;;  %568 = vmatpush.bf16.msra.mxu2 %v2371_v6 }
  0x4f   :  { %581 = vmatpush.bf16.msra.mxu3 %v2373_v7 }
  0x50   :  { %543 = vmatpush.bf16.msrb.mxu0 %v2379_v19 }
  0x52   :  { %555 = vmatpush.bf16.msrb.mxu1 %v2377_v15  ;;  %569 = vmatpush.bf16.msra.mxu2 %v2383_v22 }
  0x53   :  { %582 = vmatpush.bf16.msra.mxu3 %v2385_v23 }
  0x54   :  { %544 = vmatpush.bf16.msrb.mxu0 %v2393_v35 }
  0x56   :  { %556 = vmatpush.bf16.msrb.mxu1 %v2391_v33  ;;  %570 = vmatpush.bf16.msra.mxu2 %v2397_v40 }
  0x57   :  { %583 = vmatpush.bf16.msra.mxu3 %v2399_v18 }
  0x58   :  { %545 = vmatpush.bf16.msrb.mxu0 %v2405_v50 }
  0x5a   :  { %557 = vmatpush.bf16.msrb.mxu1 %v2403_v49  ;;  %571 = vmatpush.bf16.msra.mxu2 %v2409_v51 }
  0x5b   :  { %584 = vmatpush.bf16.msra.mxu3 %v2411_v52 }
  0x5c   :  { %683 = vmatpush.bf16.msra.mxu0 %v2314_v12 }
  0x5e   :  { %709 = vmatpush.bf16.msrb.mxu2 %v2316_v16  ;;  %558 = vmatpush.bf16.msrb.mxu1 %v2415_v57 }
  0x5f   :  { %722 = vmatpush.bf16.msrb.mxu3 %v2318_v17 }
  0x60   :  { %684 = vmatpush.bf16.msra.mxu0 %v2329_v29 }
  0x62   :  { %696 = vmatpush.bf16.msra.mxu1 %v2325_v25  ;;  %710 = vmatpush.bf16.msrb.mxu2 %v2331_v30 }
  0x63   :  { %723 = vmatpush.bf16.msrb.mxu3 %v2335_v34 }
  0x64   :  { %685 = vmatpush.bf16.msra.mxu0 %v2343_v39 }
  0x66   :  { %697 = vmatpush.bf16.msra.mxu1 %v2341_v38  ;;  %711 = vmatpush.bf16.msrb.mxu2 %v2347_v43 }
  0x67   :  { %724 = vmatpush.bf16.msrb.mxu3 %v2349_v47 }
  0x68   :  { %686 = vmatpush.bf16.msra.mxu0 %v2355_v55 }
  0x6a   :  { %698 = vmatpush.bf16.msra.mxu1 %v2353_v54  ;;  %712 = vmatpush.bf16.msrb.mxu2 %v2359_v58 }
  0x6b   :  { %725 = vmatpush.bf16.msrb.mxu3 %v2361_v59 }
  0x6c   :  { %687 = vmatpush.bf16.msra.mxu0 %v2367_v3 }
  0x6e   :  { %699 = vmatpush.bf16.msra.mxu1 %v2365_v2  ;;  %713 = vmatpush.bf16.msrb.mxu2 %v2371_v6 }
  0x6f   :  { %726 = vmatpush.bf16.msrb.mxu3 %v2373_v7 }
  0x70   :  { %688 = vmatpush.bf16.msra.mxu0 %v2379_v19 }
  0x72   :  { %700 = vmatpush.bf16.msra.mxu1 %v2377_v15  ;;  %714 = vmatpush.bf16.msrb.mxu2 %v2383_v22 }
  0x73   :  { %727 = vmatpush.bf16.msrb.mxu3 %v2385_v23 }
  0x74   :  { %689 = vmatpush.bf16.msra.mxu0 %v2393_v35 }
  0x76   :  { %701 = vmatpush.bf16.msra.mxu1 %v2391_v33  ;;  %715 = vmatpush.bf16.msrb.mxu2 %v2397_v40 }
  0x77   :  { %728 = vmatpush.bf16.msrb.mxu3 %v2399_v18 }
  0x78   :  { %690 = vmatpush.bf16.msra.mxu0 %v2405_v50 }
  0x7a   :  { %702 = vmatpush.bf16.msra.mxu1 %v2403_v49  ;;  %716 = vmatpush.bf16.msrb.mxu2 %v2409_v51 }
  0x7b   :  { %729 = vmatpush.bf16.msrb.mxu3 %v2411_v52 }
  0x7e   :  { %703 = vmatpush.bf16.msra.mxu1 %v2415_v57 }
  0x9a   :  { %v147_v63 = vpop.f32.mrf.mxu1 }
  0x9b   :  { %v148_v0 = vadd.f32 %v147_v63, %v106_v62 }
  0x9d   :  { %190 = vst [vmem:[#allocation2] sm:$0xff] %v148_v0 }
  0xa0   :  { %v173_v5 = vpop.f32.mrf.mxu2 }
  0xa1   :  { %v174_v8 = vadd.f32 %v173_v5, %v108_v1 }
  0xa2   :  { %v149_v10 = vpop.f32.mrf.mxu1 }
  0xa3   :  { %v186_v9 = vpop.f32.mrf.mxu3  ;;  %192 = vst [vmem:[#allocation2 + $0x10] sm:$0xff] %v174_v8 }
  0xa4   :  { %v187_v11 = vadd.f32 %v186_v9, %v109_v4 }
  0xa6   :  { %193 = vst [vmem:[#allocation2 + $0x18] sm:$0xff] %v187_v11 }
  0xa8   :  { %v175_v14 = vpop.f32.mrf.mxu2 }
  0xaa   :  { %v160_v21 = vpop.f32.mrf.mxu1 }
  0xab   :  { %v188_v20 = vpop.f32.mrf.mxu3  ;;  %v161_v24 = vadd.f32 %v160_v21, %v107_v13 }
  0xad   :  { %191 = vst [vmem:[#allocation2 + $0x8] sm:$0xff] %v161_v24 }
  0xb2   :  { %v162_v26 = vpop.f32.mrf.mxu1 }
  0xb4   :  { %v197_v46 = vld [vmem:[#allocation2] ss:$8 sm:$0xf] }
  0xb8   :  { %v399_v27 = vpop.f32.mrf.mxu0 }
  0xbe   :  { %v412_v28 = vpop.f32.mrf.mxu1 }
  0xbf   :  { %v446_v31 = vrot.slane %v412_v28, 7 }
  0xc0   :  { %v425_v32 = vpop.f32.mrf.mxu2  ;;  %v401_v41 = vpop.f32.mrf.mxu0 }
  0xc1   :  { %v447_v36 = vrot.slane %v425_v32, 6  ;;  %v450_v42 = vsel %vm449_vm1, %v399_v27, %v446_v31 }
  0xc3   :  { %v438_v37 = vpop.f32.mrf.mxu3 }
  0xc4   :  { %v448_v44 = vrot.slane %v438_v37, 5 }
  0xc6   :  { %v452_v45 = vsel %vm451_vm2, %v447_v36, %v448_v44  ;;  %v414_v53 = vpop.f32.mrf.mxu1 }
  0xc7   :  { %v454_v48 = vsel %vm453_vm3, %v450_v42, %v452_v45 }
  0xc8   :  { %v456_v56 = vadd.f32 %v454_v48, %v197_v46  ;;  %v427_v63 = vpop.f32.mrf.mxu2 }
  0xca   :  { %v1857_v60 = vmul.f32 -1.442695, %v456_v56  ;;  %v477_v61 = vrot.slane %v456_v56, 1  ;;  %v501_v62 = vrot.slane %v456_v56, 3  ;;  %v498_v24 = vrot.slane %v456_v56, 2 }
  0xcb   :  { %v440_v0 = vpop.f32.mrf.mxu3 }
  0xcc   :  { %1969 = vpow2.f32 %v1857_v60  ;;  %v1858_v1 = vmul.f32 -1.442695, %v477_v61  ;;  %v1859_v4 = vmul.f32 -1.442695, %v501_v62 }
  0xce   :  { %1971 = vpow2.f32 %v1858_v1 }
  0xcf   :  { %1973 = vpow2.f32 %v1859_v4 }
  0xd2   :  { %v1970_v5 = vpop.eup %1969 }
  0xd3   :  { %v460_v8 = vadd.f32 1.0, %v1970_v5 }
  0xd4   :  { %v1972_v9 = vpop.eup %1971 }
  0xd5   :  { %v1974_v10 = vpop.eup %1973  ;;  %1975 = vrcp.f32 %v460_v8  ;;  %v482_v11 = vadd.f32 1.0, %v1972_v9  ;;  %v472_v31 = vand.u32 2147483648, %v460_v8  ;;  %v470_v37 = vand.u32 2147483647, %v460_v8 }
  0xd6   :  { %v506_v13 = vadd.f32 1.0, %v1974_v10  ;;  %vm466_vm5 = vweird.f32 %v460_v8 }
  0xd7   :  { %1977 = vrcp.f32 %v482_v11  ;;  %v494_v42 = vand.u32 2147483648, %v482_v11  ;;  %v492_v46 = vand.u32 2147483647, %v482_v11  ;;  %v473_v48 = vor.u32 1.1754944e-38, %v472_v31 }
  0xd8   :  { %1979 = vrcp.f32 %v506_v13  ;;  %vm471_vm8 = vcmp.eq.f32.partialorder %v470_v37, 8.507059e+37  ;;  %vm488_vm9 = vweird.f32 %v482_v11  ;;  %vm512_vm13 = vweird.f32 %v506_v13 }
  0xd9   :  { %1981 = vtanh.f32 %v498_v24  ;;  %v495_v62 = vor.u32 1.1754944e-38, %v494_v42  ;;  %vm493_vm11 = vcmp.eq.f32.partialorder %v492_v46, 8.507059e+37 }
  0xdb   :  { %v1976_v14 = vpop.eup %1975 }
  0xdc   :  { %v462_v20 = vmul.f32 %v1976_v14, %v460_v8  ;;  %vm467_vm4 = vweird.f32 %v1976_v14 }
  0xdd   :  { %v1978_v21 = vpop.eup %1977  ;;  %vm468_vm7 = vmor %vm466_vm5, %vm467_vm4 }
  0xde   :  { %v1980_v26 = vpop.eup %1979  ;;  %v463_v27 = vsub.f32 1.0, %v462_v20  ;;  %v484_v28 = vmul.f32 %v1978_v21, %v482_v11  ;;  %vm489_vm6 = vweird.f32 %v1978_v21  ;;  %v518_v20 = vand.u32 2147483648, %v506_v13 }
  0xdf   :  { %v508_v32 = vmul.f32 %v1980_v26, %v506_v13  ;;  %vm490_vm10 = vmor %vm488_vm9, %vm489_vm6  ;;  %v1982_v0 = vpop.eup %1981  ;;  %vm513_vm12 = vweird.f32 %v1980_v26 }
  0xe0   :  { %v464_v36 = vmul.f32 %v1976_v14, %v463_v27  ;;  %v485_v41 = vsub.f32 1.0, %v484_v28  ;;  %vm514_vm14 = vmor %vm512_vm13, %vm513_vm12  ;;  %v519_v24 = vor.u32 1.1754944e-38, %v518_v20 }
  0xe1   :  { %v509_v53 = vsub.f32 1.0, %v508_v32 }
  0xe2   :  { %v465_v44 = vadd.f32 %v1976_v14, %v464_v36  ;;  %v486_v45 = vmul.f32 %v1978_v21, %v485_v41 }
  0xe3   :  { %v510_v4 = vmul.f32 %v1980_v26, %v509_v53  ;;  %v536_v53 = vld [vmem:[#allocation2 + $0x1] ss:$8 sm:$0xf] }
  0xe4   :  { %v469_v56 = vsel %vm468_vm7, %v1976_v14, %v465_v44  ;;  %v487_v60 = vadd.f32 %v1978_v21, %v486_v45  ;;  %v516_v14 = vand.u32 2147483647, %v506_v13 }
  0xe5   :  { %v474_v61 = vsel %vm471_vm8, %v473_v48, %v469_v56  ;;  %v511_v10 = vadd.f32 %v1980_v26, %v510_v4 }
  0xe6   :  { %v491_v63 = vsel %vm490_vm10, %v1978_v21, %v487_v60  ;;  %v523_v8 = vmul.f32 %v1982_v0, %v474_v61  ;;  %vm517_vm15 = vcmp.eq.f32.partialorder %v516_v14, 8.507059e+37 }
  0xe7   :  { %v496_v1 = vsel %vm493_vm11, %v495_v62, %v491_v63  ;;  %v515_v11 = vsel %vm514_vm14, %v1980_v26, %v511_v10 }
  0xe8   :  { %v522_v5 = vmul.f32 0.0, %v496_v1  ;;  %v520_v27 = vsel %vm517_vm15, %v519_v24, %v515_v11 }
  0xea   :  { %v2487_v9 = vadd.f32 %v523_v8, %v522_v5 }
  0xec   :  { %1983 = vtanh.f32 %v2487_v9 }
  0xf2   :  { %v1984_v21 = vpop.eup %1983 }
  0xf3   :  { %v2490_v28 = vmul.f32 %v1984_v21, %v520_v27 }
  0xf5   :  { %v537_v31 = vpack.c.bf16 %v2490_v28, %v2490_v28 }
  0xf7   :  { %546 = vmatmul.bf16.vlgmr.msrb.gmra.mxu0 %v537_v31  ;;  %559 = vmatmul.bf16.vlgmr.msrb.gmra.mxu1 %v537_v31 }
  0xf8   :  { %572 = vmatmul.bf16.vlgmr.msra.gmra.mxu2 %v537_v31  ;;  %585 = vmatmul.bf16.vlgmr.msra.gmra.mxu3 %v537_v31 }
  0xf9   :  { %828 = vmatpush.bf16.msrb.mxu0 %v2314_v12  ;;  %841 = vmatpush.bf16.msrb.mxu1 %v2325_v25 }
  0xfa   :  { %854 = vmatpush.bf16.msra.mxu2 %v2316_v16  ;;  %867 = vmatpush.bf16.msra.mxu3 %v2318_v17 }
  0xfd   :  { %829 = vmatpush.bf16.msrb.mxu0 %v2329_v29  ;;  %842 = vmatpush.bf16.msrb.mxu1 %v2341_v38 }
  0xfe   :  { %855 = vmatpush.bf16.msra.mxu2 %v2331_v30  ;;  %868 = vmatpush.bf16.msra.mxu3 %v2335_v34 }
 0x101   :  { %830 = vmatpush.bf16.msrb.mxu0 %v2343_v39  ;;  %843 = vmatpush.bf16.msrb.mxu1 %v2353_v54 }
 0x102   :  { %856 = vmatpush.bf16.msra.mxu2 %v2347_v43  ;;  %869 = vmatpush.bf16.msra.mxu3 %v2349_v47 }
 0x105   :  { %831 = vmatpush.bf16.msrb.mxu0 %v2355_v55  ;;  %844 = vmatpush.bf16.msrb.mxu1 %v2365_v2 }
 0x106   :  { %857 = vmatpush.bf16.msra.mxu2 %v2359_v58  ;;  %870 = vmatpush.bf16.msra.mxu3 %v2361_v59 }
 0x109   :  { %832 = vmatpush.bf16.msrb.mxu0 %v2367_v3  ;;  %845 = vmatpush.bf16.msrb.mxu1 %v2377_v15 }
 0x10a   :  { %858 = vmatpush.bf16.msra.mxu2 %v2371_v6  ;;  %871 = vmatpush.bf16.msra.mxu3 %v2373_v7 }
 0x10d   :  { %833 = vmatpush.bf16.msrb.mxu0 %v2379_v19  ;;  %846 = vmatpush.bf16.msrb.mxu1 %v2391_v33 }
 0x10e   :  { %859 = vmatpush.bf16.msra.mxu2 %v2383_v22  ;;  %872 = vmatpush.bf16.msra.mxu3 %v2385_v23 }
 0x111   :  { %834 = vmatpush.bf16.msrb.mxu0 %v2393_v35  ;;  %847 = vmatpush.bf16.msrb.mxu1 %v2403_v49 }
 0x112   :  { %860 = vmatpush.bf16.msra.mxu2 %v2397_v40  ;;  %873 = vmatpush.bf16.msra.mxu3 %v2399_v18 }
 0x115   :  { %835 = vmatpush.bf16.msrb.mxu0 %v2405_v50  ;;  %848 = vmatpush.bf16.msrb.mxu1 %v2415_v57 }
 0x116   :  { %861 = vmatpush.bf16.msra.mxu2 %v2409_v51  ;;  %874 = vmatpush.bf16.msra.mxu3 %v2411_v52 }
 0x174   :  { %v547_v13 = vpop.f32.mrf.mxu0  ;;  %v560_v26 = vpop.f32.mrf.mxu1 }
 0x175   :  { %v594_v32 = vrot.slane %v560_v26, 7 }
 0x177   :  { %v597_v46 = vsel %vm449_vm1, %v547_v13, %v594_v32 }
 0x17b   :  { %v573_v36 = vpop.f32.mrf.mxu2  ;;  %v586_v37 = vpop.f32.mrf.mxu3 }
 0x17c   :  { %v595_v41 = vrot.slane %v573_v36, 6  ;;  %v596_v42 = vrot.slane %v586_v37, 5  ;;  %v549_v44 = vpop.f32.mrf.mxu0  ;;  %v562_v45 = vpop.f32.mrf.mxu1 }
 0x17e   :  { %v598_v48 = vsel %vm451_vm2, %v595_v41, %v596_v42 }
 0x17f   :  { %v599_v56 = vsel %vm453_vm3, %v597_v46, %v598_v48 }
 0x180   :  { %v601_v60 = vadd.f32 %v599_v56, %v536_v53 }
 0x182   :  { %v1860_v61 = vmul.f32 -1.442695, %v601_v60  ;;  %v622_v62 = vrot.slane %v601_v60, 1  ;;  %v646_v63 = vrot.slane %v601_v60, 3  ;;  %v643_v13 = vrot.slane %v601_v60, 2 }
 0x183   :  { %v575_v0 = vpop.f32.mrf.mxu2  ;;  %v588_v1 = vpop.f32.mrf.mxu3 }
 0x184   :  { %1985 = vpow2.f32 %v1860_v61  ;;  %v1861_v4 = vmul.f32 -1.442695, %v622_v62  ;;  %v1862_v5 = vmul.f32 -1.442695, %v646_v63 }
 0x186   :  { %1987 = vpow2.f32 %v1861_v4 }
 0x187   :  { %1989 = vpow2.f32 %v1862_v5 }
 0x18a   :  { %v1986_v8 = vpop.eup %1985 }
 0x18b   :  { %v605_v10 = vadd.f32 1.0, %v1986_v8 }
 0x18c   :  { %v1988_v20 = vpop.eup %1987 }
 0x18d   :  { %v1990_v14 = vpop.eup %1989  ;;  %1991 = vrcp.f32 %v605_v10  ;;  %v627_v11 = vadd.f32 1.0, %v1988_v20  ;;  %v617_v37 = vand.u32 2147483648, %v605_v10  ;;  %v615_v45 = vand.u32 2147483647, %v605_v10 }
 0x18e   :  { %v651_v24 = vadd.f32 1.0, %v1990_v14  ;;  %vm611_vm4 = vweird.f32 %v605_v10 }
 0x18f   :  { %1993 = vrcp.f32 %v627_v11  ;;  %v639_v46 = vand.u32 2147483648, %v627_v11  ;;  %v637_v56 = vand.u32 2147483647, %v627_v11  ;;  %v618_v61 = vor.u32 1.1754944e-38, %v617_v37 }
 0x190   :  { %1995 = vrcp.f32 %v651_v24  ;;  %vm616_vm7 = vcmp.eq.f32.partialorder %v615_v45, 8.507059e+37  ;;  %vm633_vm8 = vweird.f32 %v627_v11  ;;  %vm657_vm12 = vweird.f32 %v651_v24 }
 0x191   :  { %1997 = vtanh.f32 %v643_v13  ;;  %v640_v1 = vor.u32 1.1754944e-38, %v639_v46  ;;  %vm638_vm10 = vcmp.eq.f32.partialorder %v637_v56, 8.507059e+37 }
 0x193   :  { %v1992_v21 = vpop.eup %1991 }
 0x194   :  { %v607_v27 = vmul.f32 %v1992_v21, %v605_v10  ;;  %vm612_vm0 = vweird.f32 %v1992_v21 }
 0x195   :  { %v1994_v31 = vpop.eup %1993  ;;  %vm613_vm6 = vmor %vm611_vm4, %vm612_vm0 }
 0x196   :  { %v1996_v26 = vpop.eup %1995  ;;  %v608_v32 = vsub.f32 1.0, %v607_v27  ;;  %v629_v36 = vmul.f32 %v1994_v31, %v627_v11  ;;  %vm634_vm5 = vweird.f32 %v1994_v31  ;;  %v661_v11 = vand.u32 2147483647, %v651_v24 }
 0x197   :  { %v653_v41 = vmul.f32 %v1996_v26, %v651_v24  ;;  %vm635_vm9 = vmor %vm633_vm8, %vm634_vm5  ;;  %v1998_v5 = vpop.eup %1997  ;;  %vm658_vm11 = vweird.f32 %v1996_v26 }
 0x198   :  { %v630_v42 = vsub.f32 1.0, %v629_v36  ;;  %v609_v44 = vmul.f32 %v1992_v21, %v608_v32  ;;  %v663_v32 = vand.u32 2147483648, %v651_v24  ;;  %vm659_vm13 = vmor %vm657_vm12, %vm658_vm11  ;;  %vm662_vm14 = vcmp.eq.f32.partialorder %v661_v11, 8.507059e+37 }
 0x199   :  { %v654_v62 = vsub.f32 1.0, %v653_v41 }
 0x19a   :  { %v610_v48 = vadd.f32 %v1992_v21, %v609_v44  ;;  %v631_v53 = vmul.f32 %v1994_v31, %v630_v42  ;;  %v664_v36 = vor.u32 1.1754944e-38, %v663_v32 }
 0x19b   :  { %v655_v10 = vmul.f32 %v1996_v26, %v654_v62 }
 0x19c   :  { %v614_v60 = vsel %vm613_vm6, %v1992_v21, %v610_v48  ;;  %v632_v63 = vadd.f32 %v1994_v31, %v631_v53 }
 0x19d   :  { %v619_v0 = vsel %vm616_vm7, %v618_v61, %v614_v60  ;;  %v656_v13 = vadd.f32 %v1996_v26, %v655_v10  ;;  %v681_v60 = vld [vmem:[#allocation2 + $0x2] ss:$8 sm:$0xf] }
 0x19e   :  { %v636_v4 = vsel %vm635_vm9, %v1994_v31, %v632_v63  ;;  %v668_v14 = vmul.f32 %v1998_v5, %v619_v0 }
 0x19f   :  { %v641_v8 = vsel %vm638_vm10, %v640_v1, %v636_v4  ;;  %v660_v21 = vsel %vm659_vm13, %v1996_v26, %v656_v13 }
 0x1a0   :  { %v667_v20 = vmul.f32 %v641_v8, %v2487_v9  ;;  %v665_v37 = vsel %vm662_vm14, %v664_v36, %v660_v21 }
 0x1a2   :  { %v2530_v27 = vadd.f32 %v668_v14, %v667_v20 }
 0x1a4   :  { %1999 = vtanh.f32 %v2530_v27 }
 0x1aa   :  { %v2000_v31 = vpop.eup %1999 }
 0x1ab   :  { %v2533_v41 = vmul.f32 %v2000_v31, %v665_v37 }
 0x1ad   :  { %v682_v9 = vpack.c.bf16 %v2533_v41, %v2533_v41 }
 0x1af   :  { %691 = vmatmul.bf16.vlgmr.msra.gmra.mxu0 %v682_v9  ;;  %704 = vmatmul.bf16.vlgmr.msra.gmra.mxu1 %v682_v9 }
 0x1b0   :  { %717 = vmatmul.bf16.vlgmr.msrb.gmra.mxu2 %v682_v9  ;;  %730 = vmatmul.bf16.vlgmr.msrb.gmra.mxu3 %v682_v9 }
 0x1b1   :  { %973 = vmatpush.bf16.msra.mxu0 %v2314_v12  ;;  %986 = vmatpush.bf16.msra.mxu1 %v2325_v25 }
 0x1b2   :  { %999 = vmatpush.bf16.msrb.mxu2 %v2316_v16  ;;  %1012 = vmatpush.bf16.msrb.mxu3 %v2318_v17 }
 0x1b5   :  { %974 = vmatpush.bf16.msra.mxu0 %v2329_v29  ;;  %987 = vmatpush.bf16.msra.mxu1 %v2341_v38 }
 0x1b6   :  { %1000 = vmatpush.bf16.msrb.mxu2 %v2331_v30  ;;  %1013 = vmatpush.bf16.msrb.mxu3 %v2335_v34 }
 0x1b9   :  { %975 = vmatpush.bf16.msra.mxu0 %v2343_v39  ;;  %988 = vmatpush.bf16.msra.mxu1 %v2353_v54 }
 0x1ba   :  { %1001 = vmatpush.bf16.msrb.mxu2 %v2347_v43  ;;  %1014 = vmatpush.bf16.msrb.mxu3 %v2349_v47 }
 0x1bd   :  { %976 = vmatpush.bf16.msra.mxu0 %v2355_v55  ;;  %989 = vmatpush.bf16.msra.mxu1 %v2365_v2 }
 0x1be   :  { %1002 = vmatpush.bf16.msrb.mxu2 %v2359_v58  ;;  %1015 = vmatpush.bf16.msrb.mxu3 %v2361_v59 }
 0x1c1   :  { %977 = vmatpush.bf16.msra.mxu0 %v2367_v3  ;;  %990 = vmatpush.bf16.msra.mxu1 %v2377_v15 }
 0x1c2   :  { %1003 = vmatpush.bf16.msrb.mxu2 %v2371_v6  ;;  %1016 = vmatpush.bf16.msrb.mxu3 %v2373_v7 }
 0x1c5   :  { %978 = vmatpush.bf16.msra.mxu0 %v2379_v19  ;;  %991 = vmatpush.bf16.msra.mxu1 %v2391_v33 }
 0x1c6   :  { %1004 = vmatpush.bf16.msrb.mxu2 %v2383_v22  ;;  %1017 = vmatpush.bf16.msrb.mxu3 %v2385_v23 }
 0x1c9   :  { %979 = vmatpush.bf16.msra.mxu0 %v2393_v35  ;;  %992 = vmatpush.bf16.msra.mxu1 %v2403_v49 }
 0x1ca   :  { %1005 = vmatpush.bf16.msrb.mxu2 %v2397_v40  ;;  %1018 = vmatpush.bf16.msrb.mxu3 %v2399_v18 }
 0x1cd   :  { %980 = vmatpush.bf16.msra.mxu0 %v2405_v50  ;;  %993 = vmatpush.bf16.msra.mxu1 %v2415_v57 }
 0x1ce   :  { %1006 = vmatpush.bf16.msrb.mxu2 %v2409_v51  ;;  %1019 = vmatpush.bf16.msrb.mxu3 %v2411_v52 }
 0x22c   :  { %v692_v24 = vpop.f32.mrf.mxu0  ;;  %v705_v26 = vpop.f32.mrf.mxu1 }
 0x22d   :  { %v739_v42 = vrot.slane %v705_v26, 7 }
 0x22f   :  { %v742_v61 = vsel %vm449_vm1, %v692_v24, %v739_v42 }
 0x233   :  { %v718_v44 = vpop.f32.mrf.mxu2  ;;  %v731_v45 = vpop.f32.mrf.mxu3 }
 0x234   :  { %v740_v46 = vrot.slane %v718_v44, 6  ;;  %v741_v48 = vrot.slane %v731_v45, 5  ;;  %v694_v53 = vpop.f32.mrf.mxu0  ;;  %v707_v56 = vpop.f32.mrf.mxu1 }
 0x236   :  { %v743_v62 = vsel %vm451_vm2, %v740_v46, %v741_v48 }
 0x237   :  { %v744_v63 = vsel %vm453_vm3, %v742_v61, %v743_v62 }
 0x238   :  { %v746_v0 = vadd.f32 %v744_v63, %v681_v60 }
 0x23a   :  { %v1863_v1 = vmul.f32 -1.442695, %v746_v0  ;;  %v767_v4 = vrot.slane %v746_v0, 1  ;;  %v791_v5 = vrot.slane %v746_v0, 3  ;;  %v788_v26 = vrot.slane %v746_v0, 2 }
 0x23b   :  { %v720_v8 = vpop.f32.mrf.mxu2  ;;  %v733_v10 = vpop.f32.mrf.mxu3 }
 0x23c   :  { %2001 = vpow2.f32 %v1863_v1  ;;  %v1864_v20 = vmul.f32 -1.442695, %v767_v4  ;;  %v1865_v14 = vmul.f32 -1.442695, %v791_v5 }
 0x23e   :  { %2003 = vpow2.f32 %v1864_v20 }
 0x23f   :  { %2005 = vpow2.f32 %v1865_v14 }
 0x242   :  { %v2002_v13 = vpop.eup %2001 }
 0x243   :  { %v750_v32 = vadd.f32 1.0, %v2002_v13 }
 0x244   :  { %v2004_v11 = vpop.eup %2003 }
 0x245   :  { %v2006_v21 = vpop.eup %2005  ;;  %2007 = vrcp.f32 %v750_v32  ;;  %v772_v36 = vadd.f32 1.0, %v2004_v11  ;;  %v762_v46 = vand.u32 2147483648, %v750_v32  ;;  %v760_v61 = vand.u32 2147483647, %v750_v32 }
 0x246   :  { %v796_v31 = vadd.f32 1.0, %v2006_v21  ;;  %vm756_vm0 = vweird.f32 %v750_v32 }
 0x247   :  { %2009 = vrcp.f32 %v772_v36  ;;  %v784_v62 = vand.u32 2147483648, %v772_v36  ;;  %v782_v1 = vand.u32 2147483647, %v772_v36  ;;  %v763_v4 = vor.u32 1.1754944e-38, %v762_v46 }
 0x248   :  { %2011 = vrcp.f32 %v796_v31  ;;  %vm761_vm6 = vcmp.eq.f32.partialorder %v760_v61, 8.507059e+37  ;;  %vm778_vm7 = vweird.f32 %v772_v36  ;;  %vm802_vm11 = vweird.f32 %v796_v31 }
 0x249   :  { %2013 = vtanh.f32 %v788_v26  ;;  %v785_v20 = vor.u32 1.1754944e-38, %v784_v62  ;;  %vm783_vm9 = vcmp.eq.f32.partialorder %v782_v1, 8.507059e+37 }
 0x24b   :  { %v2008_v37 = vpop.eup %2007 }
 0x24c   :  { %v752_v9 = vmul.f32 %v2008_v37, %v750_v32  ;;  %vm757_vm15 = vweird.f32 %v2008_v37 }
 0x24d   :  { %v2010_v24 = vpop.eup %2009  ;;  %vm758_vm5 = vmor %vm756_vm0, %vm757_vm15 }
 0x24e   :  { %v2012_v42 = vpop.eup %2011  ;;  %v753_v44 = vsub.f32 1.0, %v752_v9  ;;  %v774_v45 = vmul.f32 %v2010_v24, %v772_v36  ;;  %vm779_vm4 = vweird.f32 %v2010_v24  ;;  %v806_v36 = vand.u32 2147483647, %v796_v31 }
 0x24f   :  { %v798_v48 = vmul.f32 %v2012_v42, %v796_v31  ;;  %vm780_vm8 = vmor %vm778_vm7, %vm779_vm4  ;;  %v2014_v13 = vpop.eup %2013  ;;  %vm803_vm10 = vweird.f32 %v2012_v42 }
 0x250   :  { %v775_v53 = vsub.f32 1.0, %v774_v45  ;;  %v754_v56 = vmul.f32 %v2008_v37, %v753_v44  ;;  %v808_v45 = vand.u32 2147483648, %v796_v31  ;;  %vm804_vm12 = vmor %vm802_vm11, %vm803_vm10  ;;  %vm807_vm13 = vcmp.eq.f32.partialorder %v806_v36, 8.507059e+37 }
 0x251   :  { %v799_v5 = vsub.f32 1.0, %v798_v48  ;;  %v1543_v48 = vperm.slane %v2533_v41, 0 }
 0x252   :  { %v755_v60 = vadd.f32 %v2008_v37, %v754_v56  ;;  %v776_v63 = vmul.f32 %v2010_v24, %v775_v53  ;;  %v809_v46 = vor.u32 1.1754944e-38, %v808_v45 }
 0x253   :  { %v800_v32 = vmul.f32 %v2012_v42, %v799_v5  ;;  %v1563_v62 = vsel %vm449_vm1, %v2490_v28, %v1543_v48 }
 0x254   :  { %v759_v0 = vsel %vm758_vm5, %v2008_v37, %v755_v60  ;;  %v777_v8 = vadd.f32 %v2010_v24, %v776_v63 }
 0x255   :  { %v764_v10 = vsel %vm761_vm6, %v763_v4, %v759_v0  ;;  %v801_v44 = vadd.f32 %v2012_v42, %v800_v32 }
 0x256   :  { %v781_v14 = vsel %vm780_vm8, %v2010_v24, %v777_v8  ;;  %v813_v9 = vmul.f32 %v2014_v13, %v764_v10 }
 0x257   :  { %v786_v11 = vsel %vm783_vm9, %v785_v20, %v781_v14  ;;  %v805_v37 = vsel %vm804_vm12, %v2012_v42, %v801_v44  ;;  %v826_v20 = vld [vmem:[#allocation2 + $0x3] ss:$8 sm:$0xf] }
 0x258   :  { %v812_v21 = vmul.f32 %v786_v11, %v2530_v27  ;;  %v810_v53 = vsel %vm807_vm13, %v809_v46, %v805_v37  ;;  %vm1565_vm13 = vcmask 1042432  }
 0x25a   :  { %v2573_v26 = vadd.f32 %v813_v9, %v812_v21 }
 0x25c   :  { %2015 = vtanh.f32 %v2573_v26 }
 0x262   :  { %v2016_v24 = vpop.eup %2015 }
 0x263   :  { %v816_v56 = vmul.f32 %v2016_v24, %v810_v53 }
 0x265   :  { %v827_v27 = vpack.c.bf16 %v816_v56, %v816_v56  ;;  %v1546_v61 = vperm.slane %v816_v56, 0 }
 0x267   :  { %836 = vmatmul.bf16.vlgmr.msrb.gmra.mxu0 %v827_v27  ;;  %v2580_v60 = vsel %vm453_vm3, %v1563_v62, %v1546_v61  ;;  %849 = vmatmul.bf16.vlgmr.msrb.gmra.mxu1 %v827_v27 }
 0x268   :  { %862 = vmatmul.bf16.vlgmr.msra.gmra.mxu2 %v827_v27  ;;  %875 = vmatmul.bf16.vlgmr.msra.gmra.mxu3 %v827_v27 }
 0x269   :  { %1118 = vmatpush.bf16.msrb.mxu0 %v2314_v12  ;;  %1131 = vmatpush.bf16.msrb.mxu1 %v2325_v25 }
 0x26a   :  { %1144 = vmatpush.bf16.msra.mxu2 %v2316_v16  ;;  %1157 = vmatpush.bf16.msra.mxu3 %v2318_v17 }
 0x26d   :  { %1119 = vmatpush.bf16.msrb.mxu0 %v2329_v29  ;;  %1132 = vmatpush.bf16.msrb.mxu1 %v2341_v38 }
 0x26e   :  { %1145 = vmatpush.bf16.msra.mxu2 %v2331_v30  ;;  %1158 = vmatpush.bf16.msra.mxu3 %v2335_v34 }
 0x271   :  { %1120 = vmatpush.bf16.msrb.mxu0 %v2343_v39  ;;  %1133 = vmatpush.bf16.msrb.mxu1 %v2353_v54 }
 0x272   :  { %1146 = vmatpush.bf16.msra.mxu2 %v2347_v43  ;;  %1159 = vmatpush.bf16.msra.mxu3 %v2349_v47 }
 0x275   :  { %1121 = vmatpush.bf16.msrb.mxu0 %v2355_v55  ;;  %1134 = vmatpush.bf16.msrb.mxu1 %v2365_v2 }
 0x276   :  { %1147 = vmatpush.bf16.msra.mxu2 %v2359_v58  ;;  %1160 = vmatpush.bf16.msra.mxu3 %v2361_v59 }
 0x279   :  { %1122 = vmatpush.bf16.msrb.mxu0 %v2367_v3  ;;  %1135 = vmatpush.bf16.msrb.mxu1 %v2377_v15 }
 0x27a   :  { %1148 = vmatpush.bf16.msra.mxu2 %v2371_v6  ;;  %1161 = vmatpush.bf16.msra.mxu3 %v2373_v7 }
 0x27d   :  { %1123 = vmatpush.bf16.msrb.mxu0 %v2379_v19  ;;  %1136 = vmatpush.bf16.msrb.mxu1 %v2391_v33 }
 0x27e   :  { %1149 = vmatpush.bf16.msra.mxu2 %v2383_v22  ;;  %1162 = vmatpush.bf16.msra.mxu3 %v2385_v23 }
 0x281   :  { %1124 = vmatpush.bf16.msrb.mxu0 %v2393_v35  ;;  %1137 = vmatpush.bf16.msrb.mxu1 %v2403_v49 }
 0x282   :  { %1150 = vmatpush.bf16.msra.mxu2 %v2397_v40  ;;  %1163 = vmatpush.bf16.msra.mxu3 %v2399_v18 }
 0x285   :  { %1125 = vmatpush.bf16.msrb.mxu0 %v2405_v50  ;;  %1138 = vmatpush.bf16.msrb.mxu1 %v2415_v57 }
 0x286   :  { %1151 = vmatpush.bf16.msra.mxu2 %v2409_v51  ;;  %1164 = vmatpush.bf16.msra.mxu3 %v2411_v52 }
 0x2e4   :  { %v837_v28 = vpop.f32.mrf.mxu0  ;;  %v850_v41 = vpop.f32.mrf.mxu1 }
 0x2e5   :  { %v884_v31 = vrot.slane %v850_v41, 7 }
 0x2e7   :  { %v887_v8 = vsel %vm449_vm1, %v837_v28, %v884_v31 }
 0x2eb   :  { %v863_v42 = vpop.f32.mrf.mxu2  ;;  %v876_v63 = vpop.f32.mrf.mxu3 }
 0x2ec   :  { %v885_v1 = vrot.slane %v863_v42, 6  ;;  %v886_v4 = vrot.slane %v876_v63, 5  ;;  %v839_v5 = vpop.f32.mrf.mxu0  ;;  %v852_v0 = vpop.f32.mrf.mxu1 }
 0x2ee   :  { %v888_v10 = vsel %vm451_vm2, %v885_v1, %v886_v4 }
 0x2ef   :  { %v889_v14 = vsel %vm453_vm3, %v887_v8, %v888_v10 }
 0x2f0   :  { %v891_v13 = vadd.f32 %v889_v14, %v826_v20 }
 0x2f2   :  { %v1866_v11 = vmul.f32 -1.442695, %v891_v13  ;;  %v912_v32 = vrot.slane %v891_v13, 1  ;;  %v936_v21 = vrot.slane %v891_v13, 3  ;;  %v933_v28 = vrot.slane %v891_v13, 2 }
 0x2f3   :  { %v865_v9 = vpop.f32.mrf.mxu2  ;;  %v878_v44 = vpop.f32.mrf.mxu3 }
 0x2f4   :  { %2017 = vpow2.f32 %v1866_v11  ;;  %v1867_v45 = vmul.f32 -1.442695, %v912_v32  ;;  %v1868_v36 = vmul.f32 -1.442695, %v936_v21 }
 0x2f6   :  { %2019 = vpow2.f32 %v1867_v45 }
 0x2f7   :  { %2021 = vpow2.f32 %v1868_v36 }
 0x2fa   :  { %v2018_v37 = vpop.eup %2017 }
 0x2fb   :  { %v895_v46 = vadd.f32 1.0, %v2018_v37 }
 0x2fc   :  { %v2020_v24 = vpop.eup %2019 }
 0x2fd   :  { %v2022_v48 = vpop.eup %2021  ;;  %2023 = vrcp.f32 %v895_v46  ;;  %v917_v53 = vadd.f32 1.0, %v2020_v24  ;;  %v907_v63 = vand.u32 2147483648, %v895_v46  ;;  %v905_v0 = vand.u32 2147483647, %v895_v46 }
 0x2fe   :  { %v941_v56 = vadd.f32 1.0, %v2022_v48  ;;  %vm901_vm15 = vweird.f32 %v895_v46 }
 0x2ff   :  { %2025 = vrcp.f32 %v917_v53  ;;  %v929_v8 = vand.u32 2147483648, %v917_v53  ;;  %v927_v14 = vand.u32 2147483647, %v917_v53  ;;  %v908_v11 = vor.u32 1.1754944e-38, %v907_v63 }
 0x300   :  { %2027 = vrcp.f32 %v941_v56  ;;  %vm906_vm5 = vcmp.eq.f32.partialorder %v905_v0, 8.507059e+37  ;;  %vm923_vm6 = vweird.f32 %v917_v53  ;;  %vm947_vm10 = vweird.f32 %v941_v56 }
 0x301   :  { %2029 = vtanh.f32 %v933_v28  ;;  %v930_v44 = vor.u32 1.1754944e-38, %v929_v8  ;;  %vm928_vm8 = vcmp.eq.f32.partialorder %v927_v14, 8.507059e+37 }
 0x303   :  { %v2024_v27 = vpop.eup %2023 }
 0x304   :  { %v897_v61 = vmul.f32 %v2024_v27, %v895_v46  ;;  %vm902_vm14 = vweird.f32 %v2024_v27 }
 0x305   :  { %v2026_v62 = vpop.eup %2025  ;;  %vm903_vm4 = vmor %vm901_vm15, %vm902_vm14 }
 0x306   :  { %v2028_v41 = vpop.eup %2027  ;;  %v898_v31 = vsub.f32 1.0, %v897_v61  ;;  %v919_v42 = vmul.f32 %v2026_v62, %v917_v53  ;;  %vm924_vm0 = vweird.f32 %v2026_v62  ;;  %v951_v53 = vand.u32 2147483647, %v941_v56 }
 0x307   :  { %v943_v1 = vmul.f32 %v2028_v41, %v941_v56  ;;  %vm925_vm7 = vmor %vm923_vm6, %vm924_vm0  ;;  %v2030_v36 = vpop.eup %2029  ;;  %vm948_vm9 = vweird.f32 %v2028_v41 }
 0x308   :  { %v920_v4 = vsub.f32 1.0, %v919_v42  ;;  %v899_v5 = vmul.f32 %v2024_v27, %v898_v31  ;;  %v953_v31 = vand.u32 2147483648, %v941_v56  ;;  %vm949_vm11 = vmor %vm947_vm10, %vm948_vm9  ;;  %vm952_vm12 = vcmp.eq.f32.partialorder %v951_v53, 8.507059e+37 }
 0x309   :  { %v944_v32 = vsub.f32 1.0, %v943_v1 }
 0x30a   :  { %v900_v10 = vadd.f32 %v2024_v27, %v899_v5  ;;  %v921_v20 = vmul.f32 %v2026_v62, %v920_v4  ;;  %v954_v42 = vor.u32 1.1754944e-38, %v953_v31 }
 0x30b   :  { %v945_v46 = vmul.f32 %v2028_v41, %v944_v32 }
 0x30c   :  { %v904_v13 = vsel %vm903_vm4, %v2024_v27, %v900_v10  ;;  %v922_v21 = vadd.f32 %v2026_v62, %v921_v20 }
 0x30d   :  { %v909_v9 = vsel %vm906_vm5, %v908_v11, %v904_v13  ;;  %v946_v28 = vadd.f32 %v2028_v41, %v945_v46 }
 0x30e   :  { %v926_v45 = vsel %vm925_vm7, %v2026_v62, %v922_v21  ;;  %v958_v48 = vmul.f32 %v2030_v36, %v909_v9  ;;  %v971_v21 = vld [vmem:[#allocation2 + $0x4] ss:$8 sm:$0xf] }
 0x30f   :  { %v931_v37 = vsel %vm928_vm8, %v930_v44, %v926_v45  ;;  %v950_v27 = vsel %vm949_vm11, %v2028_v41, %v946_v28 }
 0x310   :  { %v957_v24 = vmul.f32 %v931_v37, %v2573_v26  ;;  %v955_v63 = vsel %vm952_vm12, %v954_v42, %v950_v27 }
 0x312   :  { %v2618_v61 = vadd.f32 %v958_v48, %v957_v24 }
 0x314   :  { %2031 = vtanh.f32 %v2618_v61 }
 0x31a   :  { %v2032_v62 = vpop.eup %2031 }
 0x31b   :  { %v961_v1 = vmul.f32 %v2032_v62, %v955_v63 }
 0x31d   :  { %v972_v4 = vpack.c.bf16 %v961_v1, %v961_v1  ;;  %v1549_v26 = vperm.slane %v961_v1, 0 }
 0x31f   :  { %981 = vmatmul.bf16.vlgmr.msra.gmra.mxu0 %v972_v4  ;;  %v2622_v5 = vsel %vm1565_vm13, %v2580_v60, %v1549_v26  ;;  %994 = vmatmul.bf16.vlgmr.msra.gmra.mxu1 %v972_v4  ;;  %vm1567_vm13 = vcmask 1043456  }
 0x320   :  { %1007 = vmatmul.bf16.vlgmr.msrb.gmra.mxu2 %v972_v4  ;;  %1020 = vmatmul.bf16.vlgmr.msrb.gmra.mxu3 %v972_v4 }
 0x321   :  { %1263 = vmatpush.bf16.msra.mxu0 %v2314_v12  ;;  %1276 = vmatpush.bf16.msra.mxu1 %v2325_v25 }
 0x322   :  { %1289 = vmatpush.bf16.msrb.mxu2 %v2316_v16  ;;  %1302 = vmatpush.bf16.msrb.mxu3 %v2318_v17 }
 0x325   :  { %1264 = vmatpush.bf16.msra.mxu0 %v2329_v29  ;;  %1277 = vmatpush.bf16.msra.mxu1 %v2341_v38 }
 0x326   :  { %1290 = vmatpush.bf16.msrb.mxu2 %v2331_v30  ;;  %1303 = vmatpush.bf16.msrb.mxu3 %v2335_v34 }
 0x329   :  { %1265 = vmatpush.bf16.msra.mxu0 %v2343_v39  ;;  %1278 = vmatpush.bf16.msra.mxu1 %v2353_v54 }
 0x32a   :  { %1291 = vmatpush.bf16.msrb.mxu2 %v2347_v43  ;;  %1304 = vmatpush.bf16.msrb.mxu3 %v2349_v47 }
 0x32d   :  { %1266 = vmatpush.bf16.msra.mxu0 %v2355_v55  ;;  %1279 = vmatpush.bf16.msra.mxu1 %v2365_v2 }
 0x32e   :  { %1292 = vmatpush.bf16.msrb.mxu2 %v2359_v58  ;;  %1305 = vmatpush.bf16.msrb.mxu3 %v2361_v59 }
 0x331   :  { %1267 = vmatpush.bf16.msra.mxu0 %v2367_v3  ;;  %1280 = vmatpush.bf16.msra.mxu1 %v2377_v15 }
 0x332   :  { %1293 = vmatpush.bf16.msrb.mxu2 %v2371_v6  ;;  %1306 = vmatpush.bf16.msrb.mxu3 %v2373_v7 }
 0x335   :  { %1268 = vmatpush.bf16.msra.mxu0 %v2379_v19  ;;  %1281 = vmatpush.bf16.msra.mxu1 %v2391_v33 }
 0x336   :  { %1294 = vmatpush.bf16.msrb.mxu2 %v2383_v22  ;;  %1307 = vmatpush.bf16.msrb.mxu3 %v2385_v23 }
 0x339   :  { %1269 = vmatpush.bf16.msra.mxu0 %v2393_v35  ;;  %1282 = vmatpush.bf16.msra.mxu1 %v2403_v49 }
 0x33a   :  { %1295 = vmatpush.bf16.msrb.mxu2 %v2397_v40  ;;  %1308 = vmatpush.bf16.msrb.mxu3 %v2399_v18 }
 0x33d   :  { %1270 = vmatpush.bf16.msra.mxu0 %v2405_v50  ;;  %1283 = vmatpush.bf16.msra.mxu1 %v2415_v57 }
 0x33e   :  { %1296 = vmatpush.bf16.msrb.mxu2 %v2409_v51  ;;  %1309 = vmatpush.bf16.msrb.mxu3 %v2411_v52 }
 0x39c   :  { %v982_v60 = vpop.f32.mrf.mxu0  ;;  %v995_v56 = vpop.f32.mrf.mxu1 }
 0x39d   :  { %v1029_v41 = vrot.slane %v995_v56, 7 }
 0x39f   :  { %v1032_v32 = vsel %vm449_vm1, %v982_v60, %v1029_v41 }
 0x3a3   :  { %v1008_v0 = vpop.f32.mrf.mxu2  ;;  %v1021_v8 = vpop.f32.mrf.mxu3 }
 0x3a4   :  { %v1030_v10 = vrot.slane %v1008_v0, 6  ;;  %v1031_v20 = vrot.slane %v1021_v8, 5  ;;  %v984_v14 = vpop.f32.mrf.mxu0  ;;  %v997_v11 = vpop.f32.mrf.mxu1 }
 0x3a6   :  { %v1033_v13 = vsel %vm451_vm2, %v1030_v10, %v1031_v20 }
 0x3a7   :  { %v1034_v9 = vsel %vm453_vm3, %v1032_v32, %v1033_v13 }
 0x3a8   :  { %v1036_v44 = vadd.f32 %v1034_v9, %v971_v21 }
 0x3aa   :  { %v1869_v45 = vmul.f32 -1.442695, %v1036_v44  ;;  %v1057_v36 = vrot.slane %v1036_v44, 1  ;;  %v1081_v37 = vrot.slane %v1036_v44, 3  ;;  %v1078_v60 = vrot.slane %v1036_v44, 2 }
 0x3ab   :  { %v1010_v46 = vpop.f32.mrf.mxu2  ;;  %v1023_v24 = vpop.f32.mrf.mxu3 }
 0x3ac   :  { %2033 = vpow2.f32 %v1869_v45  ;;  %v1870_v48 = vmul.f32 -1.442695, %v1057_v36  ;;  %v1871_v28 = vmul.f32 -1.442695, %v1081_v37 }
 0x3ae   :  { %2035 = vpow2.f32 %v1870_v48 }
 0x3af   :  { %2037 = vpow2.f32 %v1871_v28 }
 0x3b2   :  { %v2034_v31 = vpop.eup %2033 }
 0x3b3   :  { %v1040_v53 = vadd.f32 1.0, %v2034_v31 }
 0x3b4   :  { %v2036_v27 = vpop.eup %2035 }
 0x3b5   :  { %v2038_v42 = vpop.eup %2037  ;;  %2039 = vrcp.f32 %v1040_v53  ;;  %v1062_v62 = vadd.f32 1.0, %v2036_v27  ;;  %v1052_v8 = vand.u32 2147483648, %v1040_v53  ;;  %v1050_v11 = vand.u32 2147483647, %v1040_v53 }
 0x3b6   :  { %v1086_v63 = vadd.f32 1.0, %v2038_v42  ;;  %vm1046_vm15 = vweird.f32 %v1040_v53 }
 0x3b7   :  { %2041 = vrcp.f32 %v1062_v62  ;;  %v1074_v32 = vand.u32 2147483648, %v1062_v62  ;;  %v1072_v9 = vand.u32 2147483647, %v1062_v62  ;;  %v1053_v45 = vor.u32 1.1754944e-38, %v1052_v8 }
 0x3b8   :  { %2043 = vrcp.f32 %v1086_v63  ;;  %vm1051_vm5 = vcmp.eq.f32.partialorder %v1050_v11, 8.507059e+37  ;;  %vm1068_vm6 = vweird.f32 %v1062_v62  ;;  %vm1092_vm10 = vweird.f32 %v1086_v63 }
 0x3b9   :  { %2045 = vtanh.f32 %v1078_v60  ;;  %v1075_v24 = vor.u32 1.1754944e-38, %v1074_v32  ;;  %vm1073_vm8 = vcmp.eq.f32.partialorder %v1072_v9, 8.507059e+37 }
 0x3bb   :  { %v2040_v1 = vpop.eup %2039 }
 0x3bc   :  { %v1042_v4 = vmul.f32 %v2040_v1, %v1040_v53  ;;  %vm1047_vm14 = vweird.f32 %v2040_v1 }
 0x3bd   :  { %v2042_v26 = vpop.eup %2041  ;;  %vm1048_vm4 = vmor %vm1046_vm15, %vm1047_vm14 }
 0x3be   :  { %v2044_v56 = vpop.eup %2043  ;;  %v1043_v41 = vsub.f32 1.0, %v1042_v4  ;;  %v1064_v0 = vmul.f32 %v2042_v26, %v1062_v62  ;;  %vm1069_vm0 = vweird.f32 %v2042_v26  ;;  %v1096_v62 = vand.u32 2147483647, %v1086_v63 }
 0x3bf   :  { %v1088_v10 = vmul.f32 %v2044_v56, %v1086_v63  ;;  %vm1070_vm7 = vmor %vm1068_vm6, %vm1069_vm0  ;;  %v2046_v28 = vpop.eup %2045  ;;  %vm1093_vm9 = vweird.f32 %v2044_v56 }
 0x3c0   :  { %v1065_v20 = vsub.f32 1.0, %v1064_v0  ;;  %v1044_v14 = vmul.f32 %v2040_v1, %v1043_v41  ;;  %v1098_v41 = vand.u32 2147483648, %v1086_v63  ;;  %vm1094_vm11 = vmor %vm1092_vm10, %vm1093_vm9  ;;  %vm1097_vm12 = vcmp.eq.f32.partialorder %v1096_v62, 8.507059e+37 }
 0x3c1   :  { %v1089_v36 = vsub.f32 1.0, %v1088_v10 }
 0x3c2   :  { %v1045_v13 = vadd.f32 %v2040_v1, %v1044_v14  ;;  %v1066_v21 = vmul.f32 %v2042_v26, %v1065_v20  ;;  %v1099_v0 = vor.u32 1.1754944e-38, %v1098_v41 }
 0x3c3   :  { %v1090_v53 = vmul.f32 %v2044_v56, %v1089_v36 }
 0x3c4   :  { %v1049_v44 = vsel %vm1048_vm4, %v2040_v1, %v1045_v13  ;;  %v1067_v37 = vadd.f32 %v2042_v26, %v1066_v21 }
 0x3c5   :  { %v1054_v46 = vsel %vm1051_vm5, %v1053_v45, %v1049_v44  ;;  %v1091_v60 = vadd.f32 %v2044_v56, %v1090_v53 }
 0x3c6   :  { %v1071_v48 = vsel %vm1070_vm7, %v2042_v26, %v1067_v37  ;;  %v1103_v42 = vmul.f32 %v2046_v28, %v1054_v46 }
 0x3c7   :  { %v1076_v31 = vsel %vm1073_vm8, %v1075_v24, %v1071_v48  ;;  %v1095_v1 = vsel %vm1094_vm11, %v2044_v56, %v1091_v60 }
 0x3c8   :  { %v1102_v27 = vmul.f32 %v1076_v31, %v2618_v61  ;;  %v1100_v8 = vsel %vm1097_vm12, %v1099_v0, %v1095_v1 }
 0x3ca   :  { %v2660_v4 = vadd.f32 %v1103_v42, %v1102_v27 }
 0x3cc   :  { %2047 = vtanh.f32 %v2660_v4 }
 0x3d2   :  { %v2048_v26 = vpop.eup %2047 }
 0x3d3   :  { %v1106_v10 = vmul.f32 %v2048_v26, %v1100_v8 }
 0x3d5   :  { %v1117_v20 = vpack.c.bf16 %v1106_v10, %v1106_v10  ;;  %v1552_v61 = vperm.slane %v1106_v10, 0 }
 0x3d7   :  { %1126 = vmatmul.bf16.vlgmr.msrb.gmra.mxu0 %v1117_v20  ;;  %1139 = vmatmul.bf16.vlgmr.msrb.gmra.mxu1 %v1117_v20  ;;  %v2664_v14 = vsel %vm1567_vm13, %v2622_v5, %v1552_v61  ;;  %vm1569_vm13 = vcmask 1044480  }
 0x3d8   :  { %1152 = vmatmul.bf16.vlgmr.msra.gmra.mxu2 %v1117_v20  ;;  %1165 = vmatmul.bf16.vlgmr.msra.gmra.mxu3 %v1117_v20 }
 0x3d9   :  { %1408 = vmatpush.bf16.msrb.mxu0 %v2314_v12  ;;  %1421 = vmatpush.bf16.msrb.mxu1 %v2325_v25 }
 0x3da   :  { %1434 = vmatpush.bf16.msra.mxu2 %v2316_v16  ;;  %1447 = vmatpush.bf16.msra.mxu3 %v2318_v17 }
 0x3dd   :  { %1409 = vmatpush.bf16.msrb.mxu0 %v2329_v29  ;;  %1422 = vmatpush.bf16.msrb.mxu1 %v2341_v38 }
 0x3de   :  { %1435 = vmatpush.bf16.msra.mxu2 %v2331_v30  ;;  %1448 = vmatpush.bf16.msra.mxu3 %v2335_v34 }
 0x3e1   :  { %1410 = vmatpush.bf16.msrb.mxu0 %v2343_v39  ;;  %1423 = vmatpush.bf16.msrb.mxu1 %v2353_v54  ;;  %v1116_v54 = vld [vmem:[#allocation2 + $0x5] ss:$8 sm:$0xf] }
 0x3e2   :  { %1436 = vmatpush.bf16.msra.mxu2 %v2347_v43  ;;  %1449 = vmatpush.bf16.msra.mxu3 %v2349_v47 }
 0x3e5   :  { %1411 = vmatpush.bf16.msrb.mxu0 %v2355_v55  ;;  %1424 = vmatpush.bf16.msrb.mxu1 %v2365_v2 }
 0x3e6   :  { %1437 = vmatpush.bf16.msra.mxu2 %v2359_v58  ;;  %1450 = vmatpush.bf16.msra.mxu3 %v2361_v59 }
 0x3e9   :  { %1412 = vmatpush.bf16.msrb.mxu0 %v2367_v3  ;;  %1425 = vmatpush.bf16.msrb.mxu1 %v2377_v15 }
 0x3ea   :  { %1438 = vmatpush.bf16.msra.mxu2 %v2371_v6  ;;  %1451 = vmatpush.bf16.msra.mxu3 %v2373_v7 }
 0x3ed   :  { %1413 = vmatpush.bf16.msrb.mxu0 %v2379_v19  ;;  %1426 = vmatpush.bf16.msrb.mxu1 %v2391_v33 }
 0x3ee   :  { %1439 = vmatpush.bf16.msra.mxu2 %v2383_v22  ;;  %1452 = vmatpush.bf16.msra.mxu3 %v2385_v23 }
 0x3f1   :  { %1414 = vmatpush.bf16.msrb.mxu0 %v2393_v35  ;;  %1427 = vmatpush.bf16.msrb.mxu1 %v2403_v49 }
 0x3f2   :  { %1440 = vmatpush.bf16.msra.mxu2 %v2397_v40  ;;  %1453 = vmatpush.bf16.msra.mxu3 %v2399_v18 }
 0x3f5   :  { %1415 = vmatpush.bf16.msrb.mxu0 %v2405_v50  ;;  %1428 = vmatpush.bf16.msrb.mxu1 %v2415_v57 }
 0x3f6   :  { %1441 = vmatpush.bf16.msra.mxu2 %v2409_v51  ;;  %1454 = vmatpush.bf16.msra.mxu3 %v2411_v52 }
 0x454   :  { %v1127_v12 = vpop.f32.mrf.mxu0  ;;  %v1140_v16 = vpop.f32.mrf.mxu1 }
 0x455   :  { %v1174_v17 = vrot.slane %v1140_v16, 7 }
 0x457   :  { %v1177_v43 = vsel %vm449_vm1, %v1127_v12, %v1174_v17 }
 0x45b   :  { %v1153_v25 = vpop.f32.mrf.mxu2  ;;  %v1166_v29 = vpop.f32.mrf.mxu3 }
 0x45c   :  { %v1175_v30 = vrot.slane %v1153_v25, 6  ;;  %v1176_v34 = vrot.slane %v1166_v29, 5  ;;  %v1129_v38 = vpop.f32.mrf.mxu0  ;;  %v1142_v39 = vpop.f32.mrf.mxu1 }
 0x45e   :  { %v1178_v47 = vsel %vm451_vm2, %v1175_v30, %v1176_v34 }
 0x45f   :  { %v1179_v55 = vsel %vm453_vm3, %v1177_v43, %v1178_v47 }
 0x460   :  { %v1181_v58 = vadd.f32 %v1179_v55, %v1116_v54 }
 0x462   :  { %v1872_v59 = vmul.f32 -1.442695, %v1181_v58  ;;  %v1202_v2 = vrot.slane %v1181_v58, 1  ;;  %v1226_v3 = vrot.slane %v1181_v58, 3  ;;  %v1223_v52 = vrot.slane %v1181_v58, 2 }
 0x463   :  { %v1155_v6 = vpop.f32.mrf.mxu2  ;;  %v1168_v7 = vpop.f32.mrf.mxu3 }
 0x464   :  { %2049 = vpow2.f32 %v1872_v59  ;;  %v1873_v15 = vmul.f32 -1.442695, %v1202_v2  ;;  %v1874_v19 = vmul.f32 -1.442695, %v1226_v3 }
 0x465   :  { %v1261_v2 = vld [vmem:[#allocation2 + $0x6] ss:$8 sm:$0xf] }
 0x466   :  { %2051 = vpow2.f32 %v1873_v15 }
 0x467   :  { %2053 = vpow2.f32 %v1874_v19 }
 0x46a   :  { %v2050_v22 = vpop.eup %2049 }
 0x46b   :  { %v1185_v23 = vadd.f32 1.0, %v2050_v22 }
 0x46c   :  { %v2052_v33 = vpop.eup %2051 }
 0x46d   :  { %v2054_v35 = vpop.eup %2053  ;;  %2055 = vrcp.f32 %v1185_v23  ;;  %v1207_v40 = vadd.f32 1.0, %v2052_v33  ;;  %v1197_v56 = vand.u32 2147483648, %v1185_v23  ;;  %v1195_v21 = vand.u32 2147483647, %v1185_v23 }
 0x46e   :  { %v1231_v18 = vadd.f32 1.0, %v2054_v35  ;;  %vm1191_vm15 = vweird.f32 %v1185_v23 }
 0x46f   :  { %2057 = vrcp.f32 %v1207_v40  ;;  %v1219_v9 = vand.u32 2147483648, %v1207_v40  ;;  %v1217_v44 = vand.u32 2147483647, %v1207_v40  ;;  %v1198_v37 = vor.u32 1.1754944e-38, %v1197_v56 }
 0x470   :  { %2059 = vrcp.f32 %v1231_v18  ;;  %vm1196_vm5 = vcmp.eq.f32.partialorder %v1195_v21, 8.507059e+37  ;;  %vm1213_vm6 = vweird.f32 %v1207_v40  ;;  %v1243_v26 = vand.u32 2147483648, %v1231_v18 }
 0x471   :  { %2061 = vtanh.f32 %v1223_v52  ;;  %v1220_v31 = vor.u32 1.1754944e-38, %v1219_v9  ;;  %vm1218_vm8 = vcmp.eq.f32.partialorder %v1217_v44, 8.507059e+37  ;;  %vm1237_vm10 = vweird.f32 %v1231_v18 }
 0x472   :  { %v1241_v8 = vand.u32 2147483647, %v1231_v18  ;;  %v1244_v20 = vor.u32 1.1754944e-38, %v1243_v26 }
 0x473   :  { %v2056_v49 = vpop.eup %2055 }
 0x474   :  { %v1187_v50 = vmul.f32 %v2056_v49, %v1185_v23  ;;  %vm1192_vm14 = vweird.f32 %v2056_v49  ;;  %vm1242_vm12 = vcmp.eq.f32.partialorder %v1241_v8, 8.507059e+37 }
 0x475   :  { %v2058_v51 = vpop.eup %2057  ;;  %vm1193_vm4 = vmor %vm1191_vm15, %vm1192_vm14 }
 0x476   :  { %v2060_v57 = vpop.eup %2059  ;;  %v1188_v5 = vsub.f32 1.0, %v1187_v50  ;;  %v1209_v63 = vmul.f32 %v2058_v51, %v1207_v40  ;;  %vm1214_vm0 = vweird.f32 %v2058_v51 }
 0x477   :  { %v1233_v11 = vmul.f32 %v2060_v57, %v1231_v18  ;;  %vm1215_vm7 = vmor %vm1213_vm6, %vm1214_vm0  ;;  %v2062_v27 = vpop.eup %2061  ;;  %vm1238_vm9 = vweird.f32 %v2060_v57 }
 0x478   :  { %v1210_v32 = vsub.f32 1.0, %v1209_v63  ;;  %v1189_v13 = vmul.f32 %v2056_v49, %v1188_v5  ;;  %vm1239_vm11 = vmor %vm1237_vm10, %vm1238_vm9 }
 0x479   :  { %v1234_v46 = vsub.f32 1.0, %v1233_v11 }
 0x47a   :  { %v1190_v45 = vadd.f32 %v2056_v49, %v1189_v13  ;;  %v1211_v36 = vmul.f32 %v2058_v51, %v1210_v32 }
 0x47b   :  { %v1235_v60 = vmul.f32 %v2060_v57, %v1234_v46 }
 0x47c   :  { %v1194_v24 = vsel %vm1193_vm4, %v2056_v49, %v1190_v45  ;;  %v1212_v48 = vadd.f32 %v2058_v51, %v1211_v36 }
 0x47d   :  { %v1199_v28 = vsel %vm1196_vm5, %v1198_v37, %v1194_v24  ;;  %v1236_v0 = vadd.f32 %v2060_v57, %v1235_v60 }
 0x47e   :  { %v1216_v53 = vsel %vm1215_vm7, %v2058_v51, %v1212_v48  ;;  %v1248_v62 = vmul.f32 %v2062_v27, %v1199_v28 }
 0x47f   :  { %v1221_v42 = vsel %vm1218_vm8, %v1220_v31, %v1216_v53  ;;  %v1240_v10 = vsel %vm1239_vm11, %v2060_v57, %v1236_v0 }
 0x480   :  { %v1247_v41 = vmul.f32 %v1221_v42, %v2660_v4  ;;  %v1245_v12 = vsel %vm1242_vm12, %v1244_v20, %v1240_v10 }
 0x482   :  { %v2702_v1 = vadd.f32 %v1248_v62, %v1247_v41 }
 0x484   :  { %2063 = vtanh.f32 %v2702_v1 }
 0x48a   :  { %v2064_v61 = vpop.eup %2063 }
 0x48b   :  { %v1251_v16 = vmul.f32 %v2064_v61, %v1245_v12 }
 0x48d   :  { %v1262_v17 = vpack.c.bf16 %v1251_v16, %v1251_v16  ;;  %v1555_v4 = vperm.slane %v1251_v16, 0 }
 0x48f   :  { %1271 = vmatmul.bf16.vlgmr.msra.gmra.mxu0 %v1262_v17  ;;  %1284 = vmatmul.bf16.vlgmr.msra.gmra.mxu1 %v1262_v17  ;;  %v2706_v25 = vsel %vm1569_vm13, %v2664_v14, %v1555_v4  ;;  %vm1571_vm13 = vcmask 1045504  }
 0x490   :  { %1297 = vmatmul.bf16.vlgmr.msrb.gmra.mxu2 %v1262_v17  ;;  %1310 = vmatmul.bf16.vlgmr.msrb.gmra.mxu3 %v1262_v17 }
 0x50c   :  { %v1272_v29 = vpop.f32.mrf.mxu0  ;;  %v1285_v30 = vpop.f32.mrf.mxu1 }
 0x50d   :  { %v1319_v34 = vrot.slane %v1285_v30, 7 }
 0x50f   :  { %v1322_v58 = vsel %vm449_vm1, %v1272_v29, %v1319_v34 }
 0x513   :  { %v1298_v38 = vpop.f32.mrf.mxu2  ;;  %v1311_v39 = vpop.f32.mrf.mxu3 }
 0x514   :  { %v1320_v43 = vrot.slane %v1298_v38, 6  ;;  %v1321_v47 = vrot.slane %v1311_v39, 5  ;;  %v1274_v54 = vpop.f32.mrf.mxu0  ;;  %v1287_v55 = vpop.f32.mrf.mxu1  ;;  %v1956_v39 = vld [vmem:[#allocation12 + $0x38] sm:$0xff] }
 0x515   :  { %1646 = vmatpush.bf16.msra.mxu0 %v1956_v39  ;;  %v1955_v54 = vld [vmem:[#allocation12 + $0x30] sm:$0xff]  ;;  %v1954_v55 = vld [vmem:[#allocation12 + $0x28] sm:$0xff] }
 0x516   :  { %v1323_v59 = vsel %vm451_vm2, %v1320_v43, %v1321_v47 }
 0x517   :  { %v1324_v3 = vsel %vm453_vm3, %v1322_v58, %v1323_v59 }
 0x518   :  { %v1326_v14 = vadd.f32 %v1324_v3, %v1261_v2 }
 0x519   :  { %1647 = vmatpush.bf16.msra.mxu0 %v1955_v54 }
 0x51a   :  { %v1875_v6 = vmul.f32 -1.442695, %v1326_v14  ;;  %v1347_v7 = vrot.slane %v1326_v14, 1  ;;  %v1371_v15 = vrot.slane %v1326_v14, 3  ;;  %v1368_v63 = vrot.slane %v1326_v14, 2 }
 0x51b   :  { %v1300_v19 = vpop.f32.mrf.mxu2  ;;  %v1313_v22 = vpop.f32.mrf.mxu3 }
 0x51c   :  { %2065 = vpow2.f32 %v1875_v6  ;;  %v1876_v23 = vmul.f32 -1.442695, %v1347_v7  ;;  %v1877_v33 = vmul.f32 -1.442695, %v1371_v15  ;;  %v1953_v15 = vld [vmem:[#allocation12 + $0x20] sm:$0xff] }
 0x51d   :  { %1648 = vmatpush.bf16.msra.mxu0 %v1954_v55  ;;  %v1406_v22 = vld [vmem:[#allocation2 + $0x7] ss:$8 sm:$0xf] }
 0x51e   :  { %2067 = vpow2.f32 %v1876_v23 }
 0x51f   :  { %2069 = vpow2.f32 %v1877_v33 }
 0x521   :  { %1649 = vmatpush.bf16.msra.mxu0 %v1953_v15  ;;  %v1968_v15 = vld [vmem:[%s2734_s5] ss:$0 sm:$0xff] }
 0x522   :  { %v2066_v35 = vpop.eup %2065 }
 0x523   :  { %v1330_v40 = vadd.f32 1.0, %v2066_v35  ;;  %v1952_v35 = vld [vmem:[#allocation12 + $0x18] sm:$0xff] }
 0x524   :  { %v2068_v18 = vpop.eup %2067 }
 0x525   :  { %v2070_v49 = vpop.eup %2069  ;;  %2071 = vrcp.f32 %v1330_v40  ;;  %v1352_v50 = vadd.f32 1.0, %v2068_v18  ;;  %v1342_v13 = vand.u32 2147483648, %v1330_v40  ;;  %v1340_v36 = vand.u32 2147483647, %v1330_v40  ;;  %1650 = vmatpush.bf16.msra.mxu0 %v1952_v35 }
 0x526   :  { %v1376_v51 = vadd.f32 1.0, %v2070_v49  ;;  %vm1336_vm15 = vweird.f32 %v1330_v40 }
 0x527   :  { %2073 = vrcp.f32 %v1352_v50  ;;  %v1364_v44 = vand.u32 2147483648, %v1352_v50  ;;  %v1362_v24 = vand.u32 2147483647, %v1352_v50  ;;  %v1343_v48 = vor.u32 1.1754944e-38, %v1342_v13  ;;  %v1949_v13 = vld [vmem:[#allocation12] sm:$0xff] }
 0x528   :  { %2075 = vrcp.f32 %v1376_v51  ;;  %vm1341_vm5 = vcmp.eq.f32.partialorder %v1340_v36, 8.507059e+37  ;;  %vm1358_vm6 = vweird.f32 %v1352_v50  ;;  %v1388_v61 = vand.u32 2147483648, %v1376_v51 }
 0x529   :  { %2077 = vtanh.f32 %v1368_v63  ;;  %v1365_v42 = vor.u32 1.1754944e-38, %v1364_v44  ;;  %vm1363_vm8 = vcmp.eq.f32.partialorder %v1362_v24, 8.507059e+37  ;;  %vm1382_vm10 = vweird.f32 %v1376_v51  ;;  %v1950_v63 = vld [vmem:[#allocation12 + $0x8] sm:$0xff] }
 0x52a   :  { %v1386_v12 = vand.u32 2147483647, %v1376_v51  ;;  %v1389_v17 = vor.u32 1.1754944e-38, %v1388_v61 }
 0x52b   :  { %v2072_v52 = vpop.eup %2071 }
 0x52c   :  { %v1332_v57 = vmul.f32 %v2072_v52, %v1330_v40  ;;  %vm1337_vm14 = vweird.f32 %v2072_v52  ;;  %vm1387_vm12 = vcmp.eq.f32.partialorder %v1386_v12, 8.507059e+37 }
 0x52d   :  { %v2074_v5 = vpop.eup %2073  ;;  %vm1338_vm4 = vmor %vm1336_vm15, %vm1337_vm14 }
 0x52e   :  { %v2076_v56 = vpop.eup %2075  ;;  %v1333_v11 = vsub.f32 1.0, %v1332_v57  ;;  %v1354_v32 = vmul.f32 %v2074_v5, %v1352_v50  ;;  %vm1359_vm0 = vweird.f32 %v2074_v5 }
 0x52f   :  { %v1378_v21 = vmul.f32 %v2076_v56, %v1376_v51  ;;  %vm1360_vm7 = vmor %vm1358_vm6, %vm1359_vm0  ;;  %v2078_v41 = vpop.eup %2077  ;;  %vm1383_vm9 = vweird.f32 %v2076_v56 }
 0x530   :  { %v1355_v9 = vsub.f32 1.0, %v1354_v32  ;;  %v1334_v45 = vmul.f32 %v2072_v52, %v1333_v11  ;;  %vm1384_vm11 = vmor %vm1382_vm10, %vm1383_vm9  ;;  %vm1573_vm10 = vcmask 1046528  }
 0x531   :  { %v1379_v28 = vsub.f32 1.0, %v1378_v21 }
 0x532   :  { %v1335_v37 = vadd.f32 %v2072_v52, %v1334_v45  ;;  %v1356_v46 = vmul.f32 %v2074_v5, %v1355_v9 }
 0x533   :  { %v1380_v0 = vmul.f32 %v2076_v56, %v1379_v28 }
 0x534   :  { %v1339_v31 = vsel %vm1338_vm4, %v2072_v52, %v1335_v37  ;;  %v1357_v53 = vadd.f32 %v2074_v5, %v1356_v46 }
 0x535   :  { %v1344_v27 = vsel %vm1341_vm5, %v1343_v48, %v1339_v31  ;;  %v1381_v20 = vadd.f32 %v2076_v56, %v1380_v0 }
 0x536   :  { %v1361_v60 = vsel %vm1360_vm7, %v2074_v5, %v1357_v53  ;;  %v1393_v8 = vmul.f32 %v2078_v41, %v1344_v27  ;;  %v1951_v5 = vld [vmem:[#allocation12 + $0x10] sm:$0xff] }
 0x537   :  { %v1366_v62 = vsel %vm1363_vm8, %v1365_v42, %v1361_v60  ;;  %v1385_v16 = vsel %vm1384_vm11, %v2076_v56, %v1381_v20  ;;  %1651 = vmatpush.bf16.msra.mxu0 %v1951_v5 }
 0x538   :  { %v1392_v26 = vmul.f32 %v1366_v62, %v2702_v1  ;;  %v1390_v29 = vsel %vm1387_vm12, %v1389_v17, %v1385_v16 }
 0x53a   :  { %v2712_v10 = vadd.f32 %v1393_v8, %v1392_v26 }
 0x53b   :  { %1652 = vmatpush.bf16.msra.mxu0 %v1950_v63 }
 0x53c   :  { %2079 = vtanh.f32 %v2712_v10 }
 0x53f   :  { %1653 = vmatpush.bf16.msra.mxu0 %v1949_v13 }
 0x542   :  { %v2080_v4 = vpop.eup %2079 }
 0x543   :  { %v1396_v30 = vmul.f32 %v2080_v4, %v1390_v29 }
 0x545   :  { %v1407_v34 = vpack.c.bf16 %v1396_v30, %v1396_v30  ;;  %v1558_v1 = vperm.slane %v1396_v30, 0 }
 0x547   :  { %1416 = vmatmul.bf16.vlgmr.msrb.gmra.mxu0 %v1407_v34  ;;  %1429 = vmatmul.bf16.vlgmr.msrb.gmra.mxu1 %v1407_v34  ;;  %v2716_v38 = vsel %vm1571_vm13, %v2706_v25, %v1558_v1 }
 0x548   :  { %1442 = vmatmul.bf16.vlgmr.msra.gmra.mxu2 %v1407_v34  ;;  %1455 = vmatmul.bf16.vlgmr.msra.gmra.mxu3 %v1407_v34 }
 0x5c4   :  { %v1417_v43 = vpop.f32.mrf.mxu0  ;;  %v1430_v47 = vpop.f32.mrf.mxu1 }
 0x5c5   :  { %v1464_v58 = vrot.slane %v1430_v47, 7 }
 0x5c7   :  { %v1467_v25 = vsel %vm449_vm1, %v1417_v43, %v1464_v58 }
 0x5cb   :  { %v1443_v59 = vpop.f32.mrf.mxu2  ;;  %v1456_v2 = vpop.f32.mrf.mxu3 }
 0x5cc   :  { %v1465_v3 = vrot.slane %v1443_v59, 6  ;;  %v1466_v14 = vrot.slane %v1456_v2, 5  ;;  %v1419_v6 = vpop.f32.mrf.mxu0  ;;  %v1432_v7 = vpop.f32.mrf.mxu1 }
 0x5ce   :  { %v1468_v19 = vsel %vm451_vm2, %v1465_v3, %v1466_v14 }
 0x5cf   :  { %v1469_v23 = vsel %vm453_vm3, %v1467_v25, %v1468_v19 }
 0x5d0   :  { %v1471_v33 = vadd.f32 %v1469_v23, %v1406_v22 }
 0x5d2   :  { %v1878_v40 = vmul.f32 -1.442695, %v1471_v33  ;;  %v1492_v18 = vrot.slane %v1471_v33, 1  ;;  %v1516_v49 = vrot.slane %v1471_v33, 3  ;;  %v1513_v46 = vrot.slane %v1471_v33, 2 }
 0x5d3   :  { %v1445_v50 = vpop.f32.mrf.mxu2  ;;  %v1458_v51 = vpop.f32.mrf.mxu3 }
 0x5d4   :  { %2081 = vpow2.f32 %v1878_v40  ;;  %v1879_v52 = vmul.f32 -1.442695, %v1492_v18  ;;  %v1880_v57 = vmul.f32 -1.442695, %v1516_v49 }
 0x5d6   :  { %2083 = vpow2.f32 %v1879_v52 }
 0x5d7   :  { %2085 = vpow2.f32 %v1880_v57 }
 0x5da   :  { %v2082_v56 = vpop.eup %2081 }
 0x5db   :  { %v1475_v11 = vadd.f32 1.0, %v2082_v56 }
 0x5dc   :  { %v2084_v32 = vpop.eup %2083 }
 0x5dd   :  { %v2086_v21 = vpop.eup %2085  ;;  %2087 = vrcp.f32 %v1475_v11  ;;  %v1497_v9 = vadd.f32 1.0, %v2084_v32  ;;  %v1487_v31 = vand.u32 2147483648, %v1475_v11  ;;  %v1485_v60 = vand.u32 2147483647, %v1475_v11 }
 0x5de   :  { %v1521_v45 = vadd.f32 1.0, %v2086_v21  ;;  %vm1481_vm2 = vweird.f32 %v1475_v11 }
 0x5df   :  { %2089 = vrcp.f32 %v1497_v9  ;;  %v1509_v41 = vand.u32 2147483648, %v1497_v9  ;;  %v1507_v26 = vand.u32 2147483647, %v1497_v9  ;;  %v1488_v8 = vor.u32 1.1754944e-38, %v1487_v31 }
 0x5e0   :  { %2091 = vrcp.f32 %v1521_v45  ;;  %vm1486_vm15 = vcmp.eq.f32.partialorder %v1485_v60, 8.507059e+37  ;;  %vm1503_vm0 = vweird.f32 %v1497_v9  ;;  %v1533_v54 = vand.u32 2147483648, %v1521_v45 }
 0x5e1   :  { %2093 = vtanh.f32 %v1513_v46  ;;  %v1510_v17 = vor.u32 1.1754944e-38, %v1509_v41  ;;  %vm1508_vm5 = vcmp.eq.f32.partialorder %v1507_v26, 8.507059e+37  ;;  %vm1527_vm7 = vweird.f32 %v1521_v45 }
 0x5e2   :  { %v1531_v55 = vand.u32 2147483647, %v1521_v45  ;;  %v1534_v59 = vor.u32 1.1754944e-38, %v1533_v54 }
 0x5e3   :  { %v2088_v36 = vpop.eup %2087 }
 0x5e4   :  { %v1477_v44 = vmul.f32 %v2088_v36, %v1475_v11  ;;  %vm1482_vm1 = vweird.f32 %v2088_v36  ;;  %vm1532_vm9 = vcmp.eq.f32.partialorder %v1531_v55, 8.507059e+37 }
 0x5e5   :  { %v2090_v37 = vpop.eup %2089  ;;  %vm1483_vm14 = vmor %vm1481_vm2, %vm1482_vm1 }
 0x5e6   :  { %v2092_v24 = vpop.eup %2091  ;;  %v1478_v48 = vsub.f32 1.0, %v1477_v44  ;;  %v1499_v28 = vmul.f32 %v2090_v37, %v1497_v9  ;;  %vm1504_vm3 = vweird.f32 %v2090_v37 }
 0x5e7   :  { %v1523_v53 = vmul.f32 %v2092_v24, %v1521_v45  ;;  %vm1505_vm4 = vmor %vm1503_vm0, %vm1504_vm3  ;;  %v2094_v29 = vpop.eup %2093  ;;  %vm1528_vm6 = vweird.f32 %v2092_v24 }
 0x5e8   :  { %v1500_v27 = vsub.f32 1.0, %v1499_v28  ;;  %v1479_v42 = vmul.f32 %v2088_v36, %v1478_v48  ;;  %vm1529_vm8 = vmor %vm1527_vm7, %vm1528_vm6 }
 0x5e9   :  { %v1524_v20 = vsub.f32 1.0, %v1523_v53 }
 0x5ea   :  { %v1480_v62 = vadd.f32 %v2088_v36, %v1479_v42  ;;  %v1501_v0 = vmul.f32 %v2090_v37, %v1500_v27 }
 0x5eb   :  { %v1525_v34 = vmul.f32 %v2092_v24, %v1524_v20 }
 0x5ec   :  { %v1484_v61 = vsel %vm1483_vm14, %v2088_v36, %v1480_v62  ;;  %v1502_v12 = vadd.f32 %v2090_v37, %v1501_v0 }
 0x5ed   :  { %v1489_v16 = vsel %vm1486_vm15, %v1488_v8, %v1484_v61  ;;  %v1526_v47 = vadd.f32 %v2092_v24, %v1525_v34 }
 0x5ee   :  { %v1506_v4 = vsel %vm1505_vm4, %v2090_v37, %v1502_v12  ;;  %v1538_v39 = vmul.f32 %v2094_v29, %v1489_v16 }
 0x5ef   :  { %v1511_v30 = vsel %vm1508_vm5, %v1510_v17, %v1506_v4  ;;  %v1530_v58 = vsel %vm1529_vm8, %v2092_v24, %v1526_v47 }
 0x5f0   :  { %v1537_v1 = vmul.f32 %v1511_v30, %v2712_v10  ;;  %v1535_v3 = vsel %vm1532_vm9, %v1534_v59, %v1530_v58 }
 0x5f2   :  { %v1539_v43 = vadd.f32 %v1538_v39, %v1537_v1 }
 0x5f4   :  { %2095 = vtanh.f32 %v1539_v43 }
 0x5fa   :  { %v2096_v2 = vpop.eup %2095 }
 0x5fb   :  { %v1541_v14 = vmul.f32 %v2096_v2, %v1535_v3 }
 0x5fd   :  { %v1561_v6 = vperm.slane %v1541_v14, 0 }
 0x5ff   :  { %v1574_v7 = vsel %vm1573_vm10, %v2716_v38, %v1561_v6 }
 0x600   :  { %v1577_v10 = vpack.c.bf16 %v1574_v7, %v1574_v7 }
 0x602   :  { %1654 = vmatmul.bf16.vlgmr.msra.gmra.mxu0 %v1577_v10 }
 0x67f   :  { %v1655_v25 = vpop.f32.mrf.mxu0 }
 0x680   :  { %v1656_v19 = vadd.f32 %v1968_v15, %v1655_v25 }
 0x682   :  { %1659 = vmax.xlane.f32.xlu0 %v1656_v19 }
 0x687   :  { %v1657_v22 = vpop.f32.mrf.mxu0 }
 0x6f5   :  { %v1660_v23 = vpop.xlane.xlu0 %1659 }
 0x6f6   :  { %v1661_v33 = vsub.f32 %v1656_v19, %v1660_v23 }
 0x6f8   :  { %v1662_v35 = vmul.f32 1.442695, %v1661_v33 }
 0x6fa   :  { %2097 = vpow2.f32 %v1662_v35 }
 0x700   :  { %v2098_v40 = vpop.eup %2097 }
 0x701   :  { %1664 = vadd.xlane.f32.xlu0 %v2098_v40 }
 0x774   :  { %v1665_v18 = vpop.xlane.xlu0 %1664 }
 0x775   :  { %2099 = vrcp.f32 %v1665_v18 }
 0x77b   :  { %v2100_v38 = vpop.eup %2099 }
 0x77c   :  { %v1667_v49 = vmul.f32 %v2100_v38, %v2098_v40 }
 0x77e   :  { %1668 = vst [vmem:[#allocation13] sm:$0xff] %v1667_v49 }
 0x77f   :  { %1679 = dma.vmem_to_hbm [thread:$0]  %s1675_s24, 128, %s1677_s27, [#allocation6]  }
 0x780   :  { %2251 = dma.done.wait [#allocation6], 128  }
 0x781   :  { %2252 = vsyncadd [#allocation6], 4294967168 }
 0x782   :  { %1684 = vsyncpa [#allocation5], 1 }
 0x783   :  { %1685 = vsyncpa [#allocation8], 1 }
 0x784   :  { %1686 = vsyncpa [#allocation11], 1 }
 0x785   :  { %1687 = vsyncpa [#allocation6], 1 }

</bundles_post_ra>
